<compile_context>
chip_gen: v7x
topology: tpu7x:2x2x1
jax: 0.10.0
libtpu: 0.0.40
codegen_flags: <defaults>
</compile_context>

<pallas_src>
import functools

import jax
import jax.numpy as jnp
from jax.experimental import pallas as pl
from jax.experimental.pallas import tpu as pltpu


# ---------------------------------------------------------------------------
# helpers
# ---------------------------------------------------------------------------
_BN_EPS = 1e-5
_VMEM_LIMIT = 48 * 1024 * 1024   # headroom below v7x's 64 MiB physical VMEM


def _round_up(x, m):
    return ((x + m - 1) // m) * m


def fold_bn(w, conv_b, gamma, beta, mean, var, eps=_BN_EPS):
    """Fold eval-mode BatchNorm (running stats) into a 1x1 conv (Cin,Cout)."""
    s = gamma / jnp.sqrt(var + eps)
    w_f = w * s[None, :]
    b0 = jnp.zeros_like(beta) if conv_b is None else conv_b
    b_f = (b0 - mean) * s + beta
    return w_f, b_f


def _avg_pool_nchw(x, k):
    # TODO(synk): assumes H and W divisible by ds (matches AvgPool2d for that case)
    B, C, H, W = x.shape
    return x.reshape(B, C, H // k, k, W // k, k).mean(axis=(3, 5))


def _nearest_resize_nchw(x, out_h, out_w):
    B, C, H, W = x.shape
    return jnp.repeat(jnp.repeat(x, out_h // H, axis=2), out_w // W, axis=3)


# ---------------------------------------------------------------------------
# Pallas kernel 1: fused value/query/key 1x1 projection (lane-dense matmul)
# ---------------------------------------------------------------------------
def _fused_proj_kernel(x_ref, w_ref, b_ref, o_ref):
    """o = x @ w + b;  x:(TM,K) bf16, w:(K,Cpad) bf16, b:(1,Cpad) f32."""
    acc = jnp.dot(x_ref[...], w_ref[...], preferred_element_type=jnp.float32)
    o_ref[...] = acc + b_ref[...]


def fused_projection(x_rows, w_fused, b_fused, *, tm=256):
    """x_rows:(M,K) f32 -> (M,Cpad) f32 with bf16 MXU operands, M-tiled grid."""
    M, K = x_rows.shape
    cpad = w_fused.shape[1]
    TM = tm if M >= tm else _round_up(M, 8)
    M_pad = _round_up(M, TM)
    if M_pad != M:
        x_rows = jnp.pad(x_rows, ((0, M_pad - M), (0, 0)))
    x_bf = x_rows.astype(jnp.bfloat16)
    w_bf = w_fused.astype(jnp.bfloat16)
    out = pl.pallas_call(
        _fused_proj_kernel,
        grid=(M_pad // TM,),
        out_shape=jax.ShapeDtypeStruct((M_pad, cpad), jnp.float32),
        in_specs=[
            pl.BlockSpec((TM, K), lambda i: (i, 0)),
            pl.BlockSpec((K, cpad), lambda i: (0, 0)),    # weights stay resident
            pl.BlockSpec((1, cpad), lambda i: (0, 0)),
        ],
        out_specs=pl.BlockSpec((TM, cpad), lambda i: (i, 0)),
        compiler_params=pltpu.CompilerParams(
            dimension_semantics=("parallel",),
            vmem_limit_bytes=_VMEM_LIMIT),
    )(x_bf, w_bf, b_fused.reshape(1, cpad).astype(jnp.float32))
    return out[:M]


# ---------------------------------------------------------------------------
# Pallas kernel 2: batched local-window attention
# ---------------------------------------------------------------------------
def _pam_attn_kernel(blk_ref, o_ref, *, cv, ck, scale):
    """blk:(WB,N,Cpad) packed [value|query|key|pad]; o:(WB,N,Cv)."""
    blk = blk_ref[...]                              # f32
    v = blk[..., :cv]                               # (WB, N, Cv)
    q = blk[..., cv:cv + ck]                        # (WB, N, Ck)
    k = blk[..., cv + ck:cv + 2 * ck]               # (WB, N, Ck)
    sim = jnp.einsum('bnc,bmc->bnm', q, k,
                     preferred_element_type=jnp.float32) * scale
    sim = sim - jnp.max(sim, axis=-1, keepdims=True)
    p = jnp.exp(sim)
    denom = jnp.sum(p, axis=-1, keepdims=True)
    p = p * pl.reciprocal(denom, approx=True)       # EUP slot, free-ish
    o_ref[...] = jnp.einsum('bnm,bmc->bnc', p, v,
                            preferred_element_type=jnp.float32)


def _choose_window_batch(nwin, n, cpad):
    """Pick windows-per-grid-step: enough rows to fill tiles, bounded VMEM."""
    byte_cap = 2 * 1024 * 1024
    cap = max(1, byte_cap // (4 * n * (n + 2 * cpad)))
    target = max(1, -(-256 // n))                   # ceil(256 / n)
    best = 1
    for d in range(1, nwin + 1):
        if nwin % d == 0 and d <= cap:
            best = d
            if d >= target:
                break
    return best


def pam_attention(windows, cv, ck):
    """windows:(NWIN, N, Cpad) -> context (NWIN, N, Cv)."""
    nwin, n, cpad = windows.shape
    wb = _choose_window_batch(nwin, n, cpad)
    return pl.pallas_call(
        functools.partial(_pam_attn_kernel, cv=cv, ck=ck,
                          scale=float(ck) ** (-0.5)),
        grid=(nwin // wb,),
        out_shape=jax.ShapeDtypeStruct((nwin, n, cv), jnp.float32),
        in_specs=[pl.BlockSpec((wb, n, cpad), lambda i: (i, 0, 0))],
        out_specs=pl.BlockSpec((wb, n, cv), lambda i: (i, 0, 0)),
        compiler_params=pltpu.CompilerParams(
            dimension_semantics=("parallel",),
            vmem_limit_bytes=_VMEM_LIMIT),
    )(windows)


# ---------------------------------------------------------------------------
# _PAMBlock forward
# ---------------------------------------------------------------------------
def pam_block_forward(x, params, *, key_channels, value_channels, scale=1, ds=1):
    """x: (B, Cin, H, 2*W) NCHW -> (B, value_channels, H, 2*W)."""
    if ds != 1:
        x = _avg_pool_nchw(x, ds)
    B, cin, H, W2 = x.shape
    w = W2 // 2
    assert H % scale == 0 and w % scale == 0, "h, w must divide scale"
    ck, cv = key_channels, value_channels

    # ---- fold BN (eval mode) into the q/k convs, fuse v/q/k weights --------
    qw, qb = fold_bn(params['q_w'], params['q_b'], params['q_gamma'],
                     params['q_beta'], params['q_mean'], params['q_var'])
    kw, kb = fold_bn(params['k_w'], params['k_b'], params['k_gamma'],
                     params['k_beta'], params['k_mean'], params['k_var'])
    cqkv = cv + 2 * ck
    cpad = _round_up(cqkv, 128)
    w_fused = jnp.zeros((cin, cpad), jnp.float32)
    w_fused = w_fused.at[:, :cv].set(params['v_w'])
    w_fused = w_fused.at[:, cv:cv + ck].set(qw)
    w_fused = w_fused.at[:, cv + ck:cqkv].set(kw)
    b_fused = jnp.zeros((cpad,), jnp.float32)
    b_fused = b_fused.at[:cv].set(params['v_b'])
    b_fused = b_fused.at[cv:cv + ck].set(qb)
    b_fused = b_fused.at[cv + ck:cqkv].set(kb)

    # ---- single NCHW -> rows relayout, fused projection ---------------------
    x_rows = jnp.transpose(x, (0, 2, 3, 1)).reshape(B * H * W2, cin)
    proj = fused_projection(x_rows, w_fused, b_fused)        # (M, Cpad) f32

    # ---- window partition (one relayout of the fused tensor) ----------------
    hl, wl = H // scale, w // scale
    nwin = scale * scale * B
    n_loc = hl * wl * 2
    pw = proj.reshape(B, H, 2, w, cpad)                       # width = s*w + x
    pw = pw.reshape(B, scale, hl, 2, scale, wl, cpad)         # (b,i,y,s,j,x,c)
    pw = pw.transpose(1, 4, 0, 2, 5, 3, 6)                    # (i,j,b,y,x,s,c)
    pw = pw.reshape(nwin, n_loc, cpad)

    # ---- batched local attention --------------------------------------------
    ctx = pam_attention(pw, cv, ck)                           # (NWIN, N, Cv)

    # ---- reassemble windows back to (B, Cv, H, 2w) ---------------------------
    ctx = ctx.reshape(scale, scale, B, hl, wl, 2, cv)         # (i,j,b,y,x,s,c)
    ctx = ctx.transpose(2, 6, 0, 3, 5, 1, 4)                  # (b,c,i,y,s,j,x)
    ctx = ctx.reshape(B, cv, H, 2 * w)

    if ds != 1:
        ctx = _nearest_resize_nchw(ctx, H * ds, 2 * w * ds)
    return ctx


# ---------------------------------------------------------------------------
# Plain-JAX reference (mirrors the PyTorch forward) for a sanity check
# ---------------------------------------------------------------------------
def _reference_forward(x, params, *, key_channels, value_channels, scale, ds):
    if ds != 1:
        x = _avg_pool_nchw(x, ds)
    B, cin, H, W2 = x.shape
    w = W2 // 2
    qw, qb = fold_bn(params['q_w'], params['q_b'], params['q_gamma'],
                     params['q_beta'], params['q_mean'], params['q_var'])
    kw, kb = fold_bn(params['k_w'], params['k_b'], params['k_gamma'],
                     params['k_beta'], params['k_mean'], params['k_var'])

    def conv1x1(t, W, b):
        return jnp.einsum('bchw,cd->bdhw', t, W) + b[None, :, None, None]

    value = conv1x1(x, params['v_w'], params['v_b'])
    query = conv1x1(x, qw, qb)
    keyt = conv1x1(x, kw, kb)

    def stack2(t):
        return jnp.stack([t[..., :w], t[..., w:]], axis=4)

    value, query, keyt = stack2(value), stack2(query), stack2(keyt)
    hl, wl = H // scale, w // scale
    ctx = jnp.zeros((B, value_channels, H, w, 2), jnp.float32)
    for i in range(scale):
        for j in range(scale):
            sl = (slice(None), slice(None),
                  slice(i * hl, (i + 1) * hl), slice(j * wl, (j + 1) * wl))
            vv = value[sl].reshape(B, value_channels, -1)
            qq = query[sl].reshape(B, key_channels, -1).transpose(0, 2, 1)
            kk = keyt[sl].reshape(B, key_channels, -1)
            sim = jnp.einsum('bnc,bcm->bnm', qq, kk) * key_channels ** (-0.5)
            sim = jax.nn.softmax(sim, axis=-1)
            cl = jnp.einsum('bcm,bnm->bcn', vv, sim)
            cl = cl.reshape(B, value_channels, hl, wl, 2)
            ctx = ctx.at[sl + (slice(None),)].set(cl)
    out = jnp.concatenate([ctx[..., 0], ctx[..., 1]], axis=3)
    if ds != 1:
        out = _nearest_resize_nchw(out, H * ds, 2 * w * ds)
    return out


# ---------------------------------------------------------------------------
# deterministic params (Conv2d + eval-mode BatchNorm2d shapes from __init__)
# ---------------------------------------------------------------------------
def init_params(key, cin, ck, cv):
    ks = jax.random.split(key, 3)

    def nrm(k, shape, std):
        return jax.random.normal(k, shape, jnp.float32) * std

    return {
        'v_w': nrm(ks[0], (cin, cv), 0.02),
        'v_b': jnp.zeros((cv,), jnp.float32),
        'q_w': nrm(ks[1], (cin, ck), 0.02),
        'q_b': jnp.zeros((ck,), jnp.float32),
        'q_gamma': jnp.ones((ck,), jnp.float32),
        'q_beta': jnp.zeros((ck,), jnp.float32),
        'q_mean': jnp.zeros((ck,), jnp.float32),
        'q_var': jnp.ones((ck,), jnp.float32),
        'k_w': nrm(ks[2], (cin, ck), 0.02),
        'k_b': jnp.zeros((ck,), jnp.float32),
        'k_gamma': jnp.ones((ck,), jnp.float32),
        'k_beta': jnp.zeros((ck,), jnp.float32),
        'k_mean': jnp.zeros((ck,), jnp.float32),
        'k_var': jnp.ones((ck,), jnp.float32),
    }


if __name__ == "__main__":
    key = jax.random.PRNGKey(0)
    kp, kx = jax.random.split(key)

    in_channels, key_channels, value_channels = 64, 8, 64
    scale, ds = 2, 1
    B, H, w = 2, 16, 16                       # input is (B, C, H, 2*w)

    params = init_params(kp, in_channels, key_channels, value_channels)
    x = jax.random.normal(kx, (B, in_channels, H, 2 * w), jnp.float32)

    fwd = jax.jit(functools.partial(pam_block_forward,
                                    key_channels=key_channels,
                                    value_channels=value_channels,
                                    scale=scale, ds=ds))
    out = fwd(x, params)
    jax.block_until_ready(out)

    assert out.shape == (B, value_channels, H, 2 * w), out.shape
    assert bool(jnp.all(jnp.isfinite(out)))

    ref = _reference_forward(x, params, key_channels=key_channels,
                             value_channels=value_channels, scale=scale, ds=ds)
    max_err = float(jnp.max(jnp.abs(out - ref)))
    assert max_err < 5e-2, f"max abs err vs reference: {max_err}"

    print("KERNEL_OK")
</pallas_src>

<mosaic_0001>
module attributes {stable_mosaic.version = 11 : i64} {
  func.func @_pam_attn_kernel(%arg0: i32, %arg1: memref<2x128x128xf32, #tpu.memory_space<vmem>>, %arg2: memref<2x128x64xf32, #tpu.memory_space<vmem>>) attributes {dimension_semantics = [#tpu.dimension_semantics<parallel>], iteration_bounds = array<i64: 4>, scalar_prefetch = 0 : i64, scratch_operands = 0 : i64, tpu.core_type = #tpu.core_type<tc>, window_params = [{transform_indices = @transform_0, window_bounds = array<i64: 2, 128, 128>}, {transform_indices = @transform_1, window_bounds = array<i64: 2, 128, 64>}]} {
    %c0 = arith.constant 0 : index
    %c0_0 = arith.constant 0 : index
    %c0_1 = arith.constant 0 : index
    %0 = vector.load %arg1[%c0, %c0_0, %c0_1] : memref<2x128x128xf32, #tpu.memory_space<vmem>>, vector<2x128x128xf32>
    %1 = vector.extract_strided_slice %0 {offsets = [0, 0, 0], sizes = [2, 128, 64], strides = [1, 1, 1]} : vector<2x128x128xf32> to vector<2x128x64xf32>
    %2 = vector.extract_strided_slice %0 {offsets = [0, 0, 64], sizes = [2, 128, 8], strides = [1, 1, 1]} : vector<2x128x128xf32> to vector<2x128x8xf32>
    %3 = vector.extract_strided_slice %0 {offsets = [0, 0, 72], sizes = [2, 128, 8], strides = [1, 1, 1]} : vector<2x128x128xf32> to vector<2x128x8xf32>
    "tpu.trace_start"() <{level = 10 : i32, message = "bnc,bmc->bnm"}> : () -> ()
    %cst = arith.constant dense<0.000000e+00> : vector<2x128x128xf32>
    %4 = tpu.matmul %2, %3, %cst {dimension_numbers = #tpu.dot_dimension_numbers<[2], [2], [1], [1], [0, 0, 0, 1, 1, 1], [0], [0]>} : vector<2x128x8xf32>, vector<2x128x8xf32>, vector<2x128x128xf32> -> vector<2x128x128xf32>
    "tpu.trace_stop"() : () -> ()
    %cst_2 = arith.constant 0.353553385 : f32
    %5 = vector.broadcast %cst_2 : f32 to vector<2x128x128xf32>
    %6 = arith.mulf %4, %5 : vector<2x128x128xf32>
    %cst_3 = arith.constant dense<0xFF800000> : vector<2x128xf32>
    %7 = vector.multi_reduction <maximumf>, %6, %cst_3 [2] : vector<2x128x128xf32> to vector<2x128xf32>
    %8 = vector.shape_cast %7 : vector<2x128xf32> to vector<2x128x1xf32>
    %9 = vector.broadcast %8 : vector<2x128x1xf32> to vector<2x128x128xf32>
    %10 = arith.subf %6, %9 : vector<2x128x128xf32>
    %11 = math.exp %10 : vector<2x128x128xf32>
    %cst_4 = arith.constant dense<0.000000e+00> : vector<2x128xf32>
    %12 = vector.multi_reduction <add>, %11, %cst_4 [2] : vector<2x128x128xf32> to vector<2x128xf32>
    %13 = vector.shape_cast %12 : vector<2x128xf32> to vector<2x128x1xf32>
    %14 = tpu.reciprocal %13 {approx = true} : vector<2x128x1xf32> -> vector<2x128x1xf32>
    %15 = vector.broadcast %14 : vector<2x128x1xf32> to vector<2x128x128xf32>
    %16 = arith.mulf %11, %15 : vector<2x128x128xf32>
    "tpu.trace_start"() <{level = 10 : i32, message = "bnm,bmc->bnc"}> : () -> ()
    %cst_5 = arith.constant dense<0.000000e+00> : vector<2x128x64xf32>
    %17 = tpu.matmul %16, %1, %cst_5 {dimension_numbers = #tpu.dot_dimension_numbers<[2], [1], [1], [2], [0, 0, 0, 1, 1, 2], [0], [0]>} : vector<2x128x128xf32>, vector<2x128x64xf32>, vector<2x128x64xf32> -> vector<2x128x64xf32>
    "tpu.trace_stop"() : () -> ()
    %c0_6 = arith.constant 0 : index
    %c0_7 = arith.constant 0 : index
    %c0_8 = arith.constant 0 : index
    %18 = vector.load %arg2[%c0_6, %c0_7, %c0_8] : memref<2x128x64xf32, #tpu.memory_space<vmem>>, vector<2x128x64xf32>
    tpu.vector_store %arg2[%c0_6, %c0_7, %c0_8], %17 {strides = array<i32>} : memref<2x128x64xf32, #tpu.memory_space<vmem>>, vector<2x128x64xf32>,
    return
  }
  func.func @transform_0(%arg0: i32) -> (i32, i32, i32) {
    %c0_i32 = arith.constant 0 : i32
    %c0_i32_0 = arith.constant 0 : i32
    %c0_i32_1 = arith.constant 0 : i32
    return %arg0, %c0_i32, %c0_i32_0 : i32, i32, i32
  }
  func.func @transform_1(%arg0: i32) -> (i32, i32, i32) {
    %c0_i32 = arith.constant 0 : i32
    %c0_i32_0 = arith.constant 0 : i32
    %c0_i32_1 = arith.constant 0 : i32
    return %arg0, %c0_i32, %c0_i32_0 : i32, i32, i32
  }
}

module attributes {stable_mosaic.version = 11 : i64} {
  func.func @_fused_proj_kernel(%arg0: i32, %arg1: memref<256x64xbf16, #tpu.memory_space<vmem>>, %arg2: memref<64x128xbf16, #tpu.memory_space<vmem>>, %arg3: memref<1x128xf32, #tpu.memory_space<vmem>>, %arg4: memref<256x128xf32, #tpu.memory_space<vmem>>) attributes {dimension_semantics = [#tpu.dimension_semantics<parallel>], iteration_bounds = array<i64: 4>, scalar_prefetch = 0 : i64, scratch_operands = 0 : i64, tpu.core_type = #tpu.core_type<tc>, window_params = [{transform_indices = @transform_0, window_bounds = array<i64: 256, 64>}, {pipeline_mode = #tpu.pipeline_mode<synchronous>, transform_indices = @transform_1, window_bounds = array<i64: 64, 128>}, {pipeline_mode = #tpu.pipeline_mode<synchronous>, transform_indices = @transform_2, window_bounds = array<i64: 1, 128>}, {transform_indices = @transform_3, window_bounds = array<i64: 256, 128>}]} {
    %c0 = arith.constant 0 : index
    %c0_0 = arith.constant 0 : index
    %0 = vector.load %arg1[%c0, %c0_0] : memref<256x64xbf16, #tpu.memory_space<vmem>>, vector<256x64xbf16>
    %c0_1 = arith.constant 0 : index
    %c0_2 = arith.constant 0 : index
    %1 = vector.load %arg2[%c0_1, %c0_2] : memref<64x128xbf16, #tpu.memory_space<vmem>>, vector<64x128xbf16>
    %cst = arith.constant dense<0.000000e+00> : vector<256x128xf32>
    %2 = tpu.matmul %0, %1, %cst {dimension_numbers = #tpu.dot_dimension_numbers<[1], [0], [0], [1], [0, 0, 1, 1], [], []>} : vector<256x64xbf16>, vector<64x128xbf16>, vector<256x128xf32> -> vector<256x128xf32>
    %c0_3 = arith.constant 0 : index
    %c0_4 = arith.constant 0 : index
    %3 = vector.load %arg3[%c0_3, %c0_4] : memref<1x128xf32, #tpu.memory_space<vmem>>, vector<1x128xf32>
    %4 = vector.broadcast %3 : vector<1x128xf32> to vector<256x128xf32>
    %5 = arith.addf %2, %4 : vector<256x128xf32>
    %c0_5 = arith.constant 0 : index
    %c0_6 = arith.constant 0 : index
    %6 = vector.load %arg4[%c0_5, %c0_6] : memref<256x128xf32, #tpu.memory_space<vmem>>, vector<256x128xf32>
    tpu.vector_store %arg4[%c0_5, %c0_6], %5 {strides = array<i32>} : memref<256x128xf32, #tpu.memory_space<vmem>>, vector<256x128xf32>,
    return
  }
  func.func @transform_0(%arg0: i32) -> (i32, i32) {
    %c0_i32 = arith.constant 0 : i32
    %c0_i32_0 = arith.constant 0 : i32
    return %arg0, %c0_i32 : i32, i32
  }
  func.func @transform_1(%arg0: i32) -> (i32, i32) {
    %c0_i32 = arith.constant 0 : i32
    %c0_i32_0 = arith.constant 0 : i32
    %c0_i32_1 = arith.constant 0 : i32
    return %c0_i32, %c0_i32_0 : i32, i32
  }
  func.func @transform_2(%arg0: i32) -> (i32, i32) {
    %c0_i32 = arith.constant 0 : i32
    %c0_i32_0 = arith.constant 0 : i32
    %c0_i32_1 = arith.constant 0 : i32
    return %c0_i32, %c0_i32_0 : i32, i32
  }
  func.func @transform_3(%arg0: i32) -> (i32, i32) {
    %c0_i32 = arith.constant 0 : i32
    %c0_i32_0 = arith.constant 0 : i32
    return %arg0, %c0_i32 : i32, i32
  }
}

</mosaic_0001>

<bundles_post_ra>
// kernel: pam_block_forward.2
= control target key start
LH: loop header
LB: loop body
LE: loop exit
PB: predicated region body
PF: predicated region fallthrough
CT: control target
= control target key end

     0   :  { %s796_s12 = smov 0   ;;  %s934_s0 = inlined_call_operand.vmem [shape: bf16[1024,64], index: 0, kind: input, shape index: {}]   ;;  %s935_s1 = inlined_call_operand.vmem [shape: bf16[64,128], index: 1, kind: input, shape index: {}]   ;;  %s936_s2 = inlined_call_operand.vmem [shape: f32[1,128], index: 2, kind: input, shape index: {}]   ;;  %s937_s3 = inlined_call_operand.vmem [shape: f32[1024,128], index: 3, kind: output, shape index: {}]  }
   0x1 LB: > { %s624_s13 = sadd.s32 4294967295, %s774_s12   ;;  %p628_p0 = scmp.ge.s32.totalorder %s774_s12, 1  ;;  %s774_s12 = sphi %s796_s12, %s13_s12  }
   0x2   : > { %p138_p1 = scmp.lt.s32.totalorder %s774_s12, 5 }
   0x4   : > { %p139_p2 = pnand %p628_p0, %p138_p1 }
   0x5   : > { %v748_v0 = vld [vmem:[%s935_s1] sm:$0xff] (!%p139_p2)   ;;  %s629_s16 = sshll.u32 (!%p139_p2), %s624_s13, 5  ;;  %v749_v1 = vld [vmem:[%s935_s1 + $0x8] sm:$0xff] (!%p139_p2)   ;;  %v750_v2 = vld [vmem:[%s935_s1 + $0x10] sm:$0xff] (!%p139_p2)   ;;  %vm326_vm0 = vcmask (!%p139_p2), 523264  }
   0x6   : > { %142 = sbr.rel (%p139_p2) target bundleno = 264 (0x108), region = 32  ;;  %p163_p3 = scmp.lt.s32.totalorder (!%p139_p2), %s629_s16, 127  ;;  %692 = vmatprep.subr.bf16.mxu0 (!%p139_p2), %v748_v0  ;;  %732 = vmatprep.subr.bf16.mxu1 (!%p139_p2), %v748_v0  ;;  %v751_v3 = vld [vmem:[%s935_s1 + $0x18] sm:$0xff] (!%p139_p2)   ;;  %v860_v20 = vld [vmem:[%s936_s2] ss:$0 sm:$0xff] (!%p139_p2) }
   0x7   : > { %693 = vmatpush3.bf16.msra.mxu0 (!%p139_p2), %v748_v0  ;;  %736 = vmatpush3.bf16.msra.mxu1 (!%p139_p2), %v748_v0 }
   0x8   : > { %694 = vmatprep.subr.bf16.mxu0 (!%p139_p2), %v749_v1  ;;  %733 = vmatprep.subr.bf16.mxu1 (!%p139_p2), %v749_v1 }
   0xb   : > { %695 = vmatpush3.bf16.msra.mxu0 (!%p139_p2), %v749_v1  ;;  %737 = vmatpush3.bf16.msra.mxu1 (!%p139_p2), %v749_v1 }
   0xc   : > { %696 = vmatprep.subr.bf16.mxu0 (!%p139_p2), %v750_v2  ;;  %734 = vmatprep.subr.bf16.mxu1 (!%p139_p2), %v750_v2 }
   0xd   : > { %s939_s16 = smov (!%p163_p3, %s629_s16), 127 }
   0xe   : > { %s630_s21 = sshll.u32 %s939_s16, 2  ;;  %s632_s27 = sshll.u32 %s939_s16, 3 }
   0xf   : > { %s822_s26 = scalar_lea.vmem %s934_s0, %s630_s21  ;;  %697 = vmatpush3.bf16.msra.mxu0 %v750_v2  ;;  %738 = vmatpush3.bf16.msra.mxu1 %v750_v2  ;;  %s865_s5 = scalar_lea.vmem %s937_s3, %s632_s27 }
  0x10   : > { %v752_v4 = vld [vmem:[%s822_s26] sm:$0xff]   ;;  %698 = vmatprep.subr.bf16.mxu0 %v751_v3  ;;  %735 = vmatprep.subr.bf16.mxu1 %v751_v3  ;;  %v754_v6 = vld [vmem:[%s822_s26 + $0x8] sm:$0xff]   ;;  %v756_v8 = vld [vmem:[%s822_s26 + $0x10] sm:$0xff]  }
  0x11   : > { %v753_v5 = vld [vmem:[%s822_s26 + $0x40] sm:$0xff]   ;;  %700 = vmatprep.mubr.msk.bf16.mxu0 %vm326_vm0, %v752_v4  ;;  %v755_v7 = vld [vmem:[%s822_s26 + $0x48] sm:$0xff]   ;;  %v757_v9 = vld [vmem:[%s822_s26 + $0x50] sm:$0xff]  }
  0x12   : > { %716 = vmatprep.mubr.msk.bf16.mxu1 %vm326_vm0, %v753_v5  ;;  %v758_v10 = vld [vmem:[%s822_s26 + $0x18] sm:$0xff]   ;;  %v760_v12 = vld [vmem:[%s822_s26 + $0x20] sm:$0xff]   ;;  %v762_v14 = vld [vmem:[%s822_s26 + $0x28] sm:$0xff]  }
  0x13   : > { %699 = vmatpush3.bf16.msra.mxu0 %v751_v3  ;;  %739 = vmatpush3.bf16.msra.mxu1 %v751_v3  ;;  %v759_v11 = vld [vmem:[%s822_s26 + $0x58] sm:$0xff]   ;;  %v761_v13 = vld [vmem:[%s822_s26 + $0x60] sm:$0xff]   ;;  %v763_v15 = vld [vmem:[%s822_s26 + $0x68] sm:$0xff]  }
  0x14   : > { %v764_v16 = vld [vmem:[%s822_s26 + $0x30] sm:$0xff]   ;;  %v766_v18 = vld [vmem:[%s822_s26 + $0x38] sm:$0xff]  }
  0x15   : > { %v765_v17 = vld [vmem:[%s822_s26 + $0x70] sm:$0xff]   ;;  %v767_v19 = vld [vmem:[%s822_s26 + $0x78] sm:$0xff]  }
  0x16   : > { %701 = vmatmul.mubr.msk.bf16.vlgmr.msra.gmra.mrb[0].mxu0 %vm326_vm0, %v754_v6  ;;  %717 = vmatmul.mubr.msk.bf16.vlgmr.msra.gmra.mrb[0].mxu1 %vm326_vm0, %v755_v7 }
  0x17   : > { %704 = vmatprep.mubr.msk.bf16.mxu0 %vm326_vm0, %v756_v8  ;;  %720 = vmatprep.mubr.msk.bf16.mxu1 %vm326_vm0, %v757_v9 }
  0x1e   : > { %705 = vmatmul.mubr.msk.bf16.gmra.mrb[4].mxu0 %vm326_vm0, %v758_v10  ;;  %721 = vmatmul.mubr.msk.bf16.gmra.mrb[4].mxu1 %vm326_vm0, %v759_v11 }
  0x1f   : > { %708 = vmatprep.mubr.msk.bf16.mxu0 %vm326_vm0, %v760_v12  ;;  %724 = vmatprep.mubr.msk.bf16.mxu1 %vm326_vm0, %v761_v13 }
  0x26   : > { %709 = vmatmul.mubr.msk.bf16.gmra.mrb[8].mxu0 %vm326_vm0, %v762_v14  ;;  %725 = vmatmul.mubr.msk.bf16.gmra.mrb[8].mxu1 %vm326_vm0, %v763_v15 }
  0x27   : > { %712 = vmatprep.mubr.msk.bf16.mxu0 %vm326_vm0, %v764_v16  ;;  %728 = vmatprep.mubr.msk.bf16.mxu1 %vm326_vm0, %v765_v17 }
  0x2e   : > { %713 = vmatmul.mubr.msk.bf16.gmra.mrb[12].mxu0 %vm326_vm0, %v766_v18  ;;  %729 = vmatmul.mubr.msk.bf16.gmra.mrb[12].mxu1 %vm326_vm0, %v767_v19 }
  0xe9   : > { %v702_v21 = vpop.f32.mrb[0].mxu0  ;;  %v718_v22 = vpop.f32.mrb[0].mxu1 }
  0xea   : > { %v418_v23 = vadd.f32 %v702_v21, %v860_v20  ;;  %v482_v24 = vadd.f32 %v718_v22, %v860_v20  ;;  %v409_v25 = vpop.f32.mrb[1].mxu0  ;;  %v473_v26 = vpop.f32.mrb[1].mxu1 }
  0xeb   : > { %v410_v27 = vadd.f32 %v860_v20, %v409_v25  ;;  %v474_v28 = vadd.f32 %v860_v20, %v473_v26  ;;  %v703_v29 = vpop.f32.mrb[2].mxu0  ;;  %v719_v30 = vpop.f32.mrb[2].mxu1 }
  0xec   : > { %538 = vst [vmem:[%s865_s5 + $0x10] sm:$0xff] %v418_v23  ;;  %554 = vst [vmem:[%s865_s5 + $0x90] sm:$0xff] %v482_v24  ;;  %v421_v31 = vadd.f32 %v703_v29, %v860_v20  ;;  %v485_v32 = vadd.f32 %v719_v30, %v860_v20  ;;  %v412_v33 = vpop.f32.mrb[3].mxu0  ;;  %v476_v34 = vpop.f32.mrb[3].mxu1 }
  0xed   : > { %536 = vst [vmem:[%s865_s5] sm:$0xff] %v410_v27  ;;  %552 = vst [vmem:[%s865_s5 + $0x80] sm:$0xff] %v474_v28  ;;  %v413_v35 = vadd.f32 %v860_v20, %v412_v33  ;;  %v477_v36 = vadd.f32 %v860_v20, %v476_v34 }
  0xee   : > { %539 = vst [vmem:[%s865_s5 + $0x18] sm:$0xff] %v421_v31  ;;  %555 = vst [vmem:[%s865_s5 + $0x98] sm:$0xff] %v485_v32 }
  0xef   : > { %537 = vst [vmem:[%s865_s5 + $0x8] sm:$0xff] %v413_v35  ;;  %553 = vst [vmem:[%s865_s5 + $0x88] sm:$0xff] %v477_v36 }
  0xf1   : > { %v706_v37 = vpop.f32.mrb[4].mxu0  ;;  %v722_v38 = vpop.f32.mrb[4].mxu1 }
  0xf2   : > { %v434_v39 = vadd.f32 %v706_v37, %v860_v20  ;;  %v498_v40 = vadd.f32 %v722_v38, %v860_v20  ;;  %v425_v41 = vpop.f32.mrb[5].mxu0  ;;  %v489_v42 = vpop.f32.mrb[5].mxu1 }
  0xf3   : > { %v426_v43 = vadd.f32 %v860_v20, %v425_v41  ;;  %v490_v44 = vadd.f32 %v860_v20, %v489_v42  ;;  %v707_v45 = vpop.f32.mrb[6].mxu0  ;;  %v723_v46 = vpop.f32.mrb[6].mxu1 }
  0xf4   : > { %542 = vst [vmem:[%s865_s5 + $0x30] sm:$0xff] %v434_v39  ;;  %558 = vst [vmem:[%s865_s5 + $0xb0] sm:$0xff] %v498_v40  ;;  %v437_v47 = vadd.f32 %v707_v45, %v860_v20  ;;  %v501_v48 = vadd.f32 %v723_v46, %v860_v20  ;;  %v428_v49 = vpop.f32.mrb[7].mxu0  ;;  %v492_v50 = vpop.f32.mrb[7].mxu1 }
  0xf5   : > { %540 = vst [vmem:[%s865_s5 + $0x20] sm:$0xff] %v426_v43  ;;  %556 = vst [vmem:[%s865_s5 + $0xa0] sm:$0xff] %v490_v44  ;;  %v429_v51 = vadd.f32 %v860_v20, %v428_v49  ;;  %v493_v52 = vadd.f32 %v860_v20, %v492_v50 }
  0xf6   : > { %543 = vst [vmem:[%s865_s5 + $0x38] sm:$0xff] %v437_v47  ;;  %559 = vst [vmem:[%s865_s5 + $0xb8] sm:$0xff] %v501_v48 }
  0xf7   : > { %541 = vst [vmem:[%s865_s5 + $0x28] sm:$0xff] %v429_v51  ;;  %557 = vst [vmem:[%s865_s5 + $0xa8] sm:$0xff] %v493_v52 }
  0xf9   : > { %v710_v53 = vpop.f32.mrb[8].mxu0  ;;  %v726_v54 = vpop.f32.mrb[8].mxu1 }
  0xfa   : > { %v450_v55 = vadd.f32 %v710_v53, %v860_v20  ;;  %v514_v56 = vadd.f32 %v726_v54, %v860_v20  ;;  %v441_v57 = vpop.f32.mrb[9].mxu0  ;;  %v505_v58 = vpop.f32.mrb[9].mxu1 }
  0xfb   : > { %v442_v59 = vadd.f32 %v860_v20, %v441_v57  ;;  %v506_v60 = vadd.f32 %v860_v20, %v505_v58  ;;  %v711_v61 = vpop.f32.mrb[10].mxu0  ;;  %v727_v62 = vpop.f32.mrb[10].mxu1 }
  0xfc   : > { %546 = vst [vmem:[%s865_s5 + $0x50] sm:$0xff] %v450_v55  ;;  %562 = vst [vmem:[%s865_s5 + $0xd0] sm:$0xff] %v514_v56  ;;  %v453_v63 = vadd.f32 %v711_v61, %v860_v20  ;;  %v517_v0 = vadd.f32 %v727_v62, %v860_v20  ;;  %v444_v1 = vpop.f32.mrb[11].mxu0  ;;  %v508_v2 = vpop.f32.mrb[11].mxu1 }
  0xfd   : > { %544 = vst [vmem:[%s865_s5 + $0x40] sm:$0xff] %v442_v59  ;;  %560 = vst [vmem:[%s865_s5 + $0xc0] sm:$0xff] %v506_v60  ;;  %v445_v3 = vadd.f32 %v860_v20, %v444_v1  ;;  %v509_v4 = vadd.f32 %v860_v20, %v508_v2 }
  0xfe   : > { %547 = vst [vmem:[%s865_s5 + $0x58] sm:$0xff] %v453_v63  ;;  %563 = vst [vmem:[%s865_s5 + $0xd8] sm:$0xff] %v517_v0 }
  0xff   : > { %545 = vst [vmem:[%s865_s5 + $0x48] sm:$0xff] %v445_v3  ;;  %561 = vst [vmem:[%s865_s5 + $0xc8] sm:$0xff] %v509_v4 }
 0x101   : > { %v714_v5 = vpop.f32.mrb[12].mxu0  ;;  %v730_v6 = vpop.f32.mrb[12].mxu1 }
 0x102   : > { %v466_v7 = vadd.f32 %v714_v5, %v860_v20  ;;  %v530_v8 = vadd.f32 %v730_v6, %v860_v20  ;;  %v457_v9 = vpop.f32.mrb[13].mxu0  ;;  %v521_v10 = vpop.f32.mrb[13].mxu1 }
 0x103   : > { %v458_v11 = vadd.f32 %v860_v20, %v457_v9  ;;  %v522_v12 = vadd.f32 %v860_v20, %v521_v10  ;;  %v715_v13 = vpop.f32.mrb[14].mxu0  ;;  %v731_v14 = vpop.f32.mrb[14].mxu1 }
 0x104   : > { %550 = vst [vmem:[%s865_s5 + $0x70] sm:$0xff] %v466_v7  ;;  %566 = vst [vmem:[%s865_s5 + $0xf0] sm:$0xff] %v530_v8  ;;  %v469_v15 = vadd.f32 %v715_v13, %v860_v20  ;;  %v533_v16 = vadd.f32 %v731_v14, %v860_v20  ;;  %v460_v17 = vpop.f32.mrb[15].mxu0  ;;  %v524_v18 = vpop.f32.mrb[15].mxu1 }
 0x105   : > { %548 = vst [vmem:[%s865_s5 + $0x60] sm:$0xff] %v458_v11  ;;  %564 = vst [vmem:[%s865_s5 + $0xe0] sm:$0xff] %v522_v12  ;;  %v461_v19 = vadd.f32 %v860_v20, %v460_v17  ;;  %v525_v21 = vadd.f32 %v860_v20, %v524_v18 }
 0x106   : > { %551 = vst [vmem:[%s865_s5 + $0x78] sm:$0xff] %v469_v15  ;;  %567 = vst [vmem:[%s865_s5 + $0xf8] sm:$0xff] %v533_v16 }
 0x107   : > { %549 = vst [vmem:[%s865_s5 + $0x68] sm:$0xff] %v461_v19  ;;  %565 = vst [vmem:[%s865_s5 + $0xe8] sm:$0xff] %v525_v21 }
 0x108 PF: > { %s13_s12 = sadd.s32 1, %s774_s12  }
 0x109   : > { %p10_p4 = scmp.ge.s32.totalorder %s13_s12, 6  }
 0x10b   :  { %12 = sbr.rel (!%p10_p4) target bundleno = 1 (0x1), region = 62 }

// kernel: pam_block_forward.3
= control target key start
LH: loop header
LB: loop body
LE: loop exit
PB: predicated region body
PF: predicated region fallthrough
CT: control target
= control target key end

     0   :  { %s2266_s6 = smov 0   ;;  %s2956_s0 = inlined_call_operand.vmem [shape: f32[8,128,128], index: 0, kind: input, shape index: {}]   ;;  %s2957_s1 = inlined_call_operand.vmem [shape: f32[8,128,64], index: 1, kind: output, shape index: {}]  }
   0x1 LB: > { %s1437_s7 = sadd.s32 4294967295, %s2252_s6   ;;  %p1441_p0 = scmp.ge.s32.totalorder %s2252_s6, 1  ;;  %s2252_s6 = sphi %s2266_s6, %s11_s6  }
   0x2   : > { %p89_p1 = scmp.lt.s32.totalorder %s2252_s6, 5 }
   0x4   : > { %p90_p2 = pnand %p1441_p0, %p89_p1 }
   0x6   : > { %93 = sbr.rel (%p90_p2) target bundleno = 1015 (0x3f7), region = 24 }
   0xd   : > { %s1442_s8 = sshll.u32 %s1437_s7, 1  ;;  %s2254_s13 = smov 56   ;;  %vm237_vm0 = vcmask 64512   ;;  %vm1346_vm2 = vcmask 523264  }
   0xe   : > { %p112_p3 = scmp.lt.s32.totalorder %s1442_s8, 7  ;;  %s2255_s14 = smov 64   ;;  %vm2494_vm1 = vmpackc.low %vm237_vm0, %vm237_vm0 }
  0x10   : > { %s2979_s8 = smov (!%p112_p3, %s1442_s8), 7 }
  0x11   : > { %s1514_s9 = sshll.u32 %s2979_s8, 7 }
  0x12   : > { %s2282_s12 = scalar_lea.vmem %s2956_s0, %s1514_s9  ;;  %s2887_s17 = scalar_lea.vmem %s2957_s1, %s1514_s9 }
  0x13   : > { %v2285_v0 = vld [vmem:[%s2282_s12] sm:$0xff]  ;;  %v2288_v1 = vld [vmem:[%s2282_s12 + $0x8] sm:$0xff]  ;;  %v2299_v5 = vld [vmem:[%s2282_s12 + $0x10] sm:$0xff] }
  0x14   : > { %v2291_v2 = vld [vmem:[%s2282_s12 + $0x80] sm:$0xff]  ;;  %v2038_v3 = vpack.i.bf16 %v2288_v1, %v2285_v0  ;;  %v2296_v4 = vld [vmem:[%s2282_s12 + $0x88] sm:$0xff]  ;;  %v2302_v6 = vld [vmem:[%s2282_s12 + $0x18] sm:$0xff] }
  0x15   : > { %v2048_v7 = vpack.i.bf16 %v2302_v6, %v2299_v5  ;;  %v2307_v8 = vld [vmem:[%s2282_s12 + $0x90] sm:$0xff]  ;;  %v2310_v9 = vld [vmem:[%s2282_s12 + $0x98] sm:$0xff]  ;;  %v2043_v10 = vpack.i.bf16 %v2296_v4, %v2291_v2  ;;  %v2319_v12 = vld [vmem:[%s2282_s12 + $0x20] sm:$0xff] }
  0x16   : > { %2039 = vrot.lane.b32.xlu0 %v2038_v3, %s2254_s13  ;;  %v2053_v11 = vpack.i.bf16 %v2310_v9, %v2307_v8  ;;  %v2322_v13 = vld [vmem:[%s2282_s12 + $0x28] sm:$0xff]  ;;  %v2325_v14 = vld [vmem:[%s2282_s12 + $0xa0] sm:$0xff]  ;;  %v2337_v18 = vld [vmem:[%s2282_s12 + $0x30] sm:$0xff] }
  0x17   : > { %2049 = vrot.lane.b32.xlu1 %v2048_v7, %s2254_s13  ;;  %v2328_v15 = vld [vmem:[%s2282_s12 + $0xa8] sm:$0xff]  ;;  %v2058_v16 = vpack.i.bf16 %v2322_v13, %v2319_v12  ;;  %v2340_v19 = vld [vmem:[%s2282_s12 + $0x38] sm:$0xff]  ;;  %v2343_v20 = vld [vmem:[%s2282_s12 + $0xb0] sm:$0xff] }
  0x18   : > { %v2063_v17 = vpack.i.bf16 %v2328_v15, %v2325_v14  ;;  %v2346_v21 = vld [vmem:[%s2282_s12 + $0xb8] sm:$0xff]  ;;  %v2068_v22 = vpack.i.bf16 %v2340_v19, %v2337_v18  ;;  %v2355_v24 = vld [vmem:[%s2282_s12 + $0x40] sm:$0xff]  ;;  %v2358_v25 = vld [vmem:[%s2282_s12 + $0x48] sm:$0xff] }
  0x19   : > { %v2073_v23 = vpack.i.bf16 %v2346_v21, %v2343_v20  ;;  %v2361_v26 = vld [vmem:[%s2282_s12 + $0xc0] sm:$0xff]  ;;  %v2364_v27 = vld [vmem:[%s2282_s12 + $0xc8] sm:$0xff]  ;;  %v2078_v28 = vpack.i.bf16 %v2358_v25, %v2355_v24  ;;  %v2373_v30 = vld [vmem:[%s2282_s12 + $0x50] sm:$0xff] }
  0x1a   : > { %2044 = vrot.lane.b32.xlu0 %v2043_v10, %s2254_s13  ;;  %v2083_v29 = vpack.i.bf16 %v2364_v27, %v2361_v26  ;;  %v2376_v31 = vld [vmem:[%s2282_s12 + $0x58] sm:$0xff]  ;;  %v2379_v32 = vld [vmem:[%s2282_s12 + $0xd0] sm:$0xff]  ;;  %v2391_v36 = vld [vmem:[%s2282_s12 + $0x60] sm:$0xff] }
  0x1b   : > { %2054 = vrot.lane.b32.xlu1 %v2053_v11, %s2254_s13  ;;  %v2382_v33 = vld [vmem:[%s2282_s12 + $0xd8] sm:$0xff]  ;;  %v2088_v34 = vpack.i.bf16 %v2376_v31, %v2373_v30  ;;  %v2394_v37 = vld [vmem:[%s2282_s12 + $0x68] sm:$0xff]  ;;  %v2397_v38 = vld [vmem:[%s2282_s12 + $0xe0] sm:$0xff] }
  0x1c   : > { %v2093_v35 = vpack.i.bf16 %v2382_v33, %v2379_v32  ;;  %2964 = vst [vmem:[#allocation2_spill] sm:$0xff] %v2397_v38  ;;  %v2400_v39 = vld [vmem:[%s2282_s12 + $0xe8] sm:$0xff]  ;;  %v2098_v40 = vpack.i.bf16 %v2394_v37, %v2391_v36  ;;  %v2409_v42 = vld [vmem:[%s2282_s12 + $0x70] sm:$0xff]  ;;  %v2412_v43 = vld [vmem:[%s2282_s12 + $0x78] sm:$0xff] }
  0x1d   : > { %2965 = vst [vmem:[#allocation3_spill] sm:$0xff] %v2400_v39  ;;  %v2103_v41 = vpack.i.bf16 %v2400_v39, %v2397_v38  ;;  %2966 = vst [vmem:[#allocation4_spill] sm:$0xff] %v2409_v42  ;;  %v2415_v44 = vld [vmem:[%s2282_s12 + $0xf0] sm:$0xff]  ;;  %v2418_v45 = vld [vmem:[%s2282_s12 + $0xf8] sm:$0xff]  ;;  %v2108_v46 = vpack.i.bf16 %v2412_v43, %v2409_v42 }
  0x1e   : > { %2059 = vrot.lane.b32.xlu0 %v2058_v16, %s2254_s13  ;;  %2967 = vst [vmem:[#allocation5_spill] sm:$0xff] %v2412_v43  ;;  %2968 = vst [vmem:[#allocation6_spill] sm:$0xff] %v2415_v44  ;;  %v2113_v47 = vpack.i.bf16 %v2418_v45, %v2415_v44 }
  0x1f   : > { %2064 = vrot.lane.b32.xlu1 %v2063_v17, %s2254_s13  ;;  %2969 = vst [vmem:[#allocation7_spill] sm:$0xff] %v2418_v45 }
  0x22   : > { %2069 = vrot.lane.b32.xlu0 %v2068_v22, %s2254_s13 }
  0x23   : > { %2074 = vrot.lane.b32.xlu1 %v2073_v23, %s2254_s13 }
  0x26   : > { %2079 = vrot.lane.b32.xlu0 %v2078_v28, %s2254_s13 }
  0x27   : > { %2084 = vrot.lane.b32.xlu1 %v2083_v29, %s2254_s13 }
  0x2a   : > { %2089 = vrot.lane.b32.xlu0 %v2088_v34, %s2254_s13 }
  0x2b   : > { %2094 = vrot.lane.b32.xlu1 %v2093_v35, %s2254_s13 }
  0x2e   : > { %2099 = vrot.lane.b32.xlu0 %v2098_v40, %s2254_s13 }
  0x2f   : > { %2104 = vrot.lane.b32.xlu1 %v2103_v41, %s2254_s13 }
  0x32   : > { %2109 = vrot.lane.b32.xlu0 %v2108_v46, %s2254_s13 }
  0x33   : > { %2114 = vrot.lane.b32.xlu1 %v2113_v47, %s2254_s13 }
  0x36   : > { %173 = vrot.lane.b32.xlu0 %v2285_v0, %s2255_s14 }
  0x37   : > { %175 = vrot.lane.b32.xlu1 %v2288_v1, %s2255_s14 }
  0x3a   : > { %463 = vrot.lane.b32.xlu0 %v2291_v2, %s2255_s14 }
  0x3b   : > { %465 = vrot.lane.b32.xlu1 %v2296_v4, %s2255_s14 }
  0x3e   : > { %177 = vrot.lane.b32.xlu0 %v2299_v5, %s2255_s14 }
  0x3f   : > { %179 = vrot.lane.b32.xlu1 %v2302_v6, %s2255_s14 }
  0x42   : > { %467 = vrot.lane.b32.xlu0 %v2307_v8, %s2255_s14 }
  0x43   : > { %469 = vrot.lane.b32.xlu1 %v2310_v9, %s2255_s14 }
  0x46   : > { %181 = vrot.lane.b32.xlu0 %v2319_v12, %s2255_s14 }
  0x47   : > { %183 = vrot.lane.b32.xlu1 %v2322_v13, %s2255_s14 }
  0x4a   : > { %471 = vrot.lane.b32.xlu0 %v2325_v14, %s2255_s14 }
  0x4b   : > { %473 = vrot.lane.b32.xlu1 %v2328_v15, %s2255_s14 }
  0x4e   : > { %185 = vrot.lane.b32.xlu0 %v2337_v18, %s2255_s14 }
  0x4f   : > { %187 = vrot.lane.b32.xlu1 %v2340_v19, %s2255_s14 }
  0x52   : > { %475 = vrot.lane.b32.xlu0 %v2343_v20, %s2255_s14 }
  0x53   : > { %477 = vrot.lane.b32.xlu1 %v2346_v21, %s2255_s14 }
  0x56   : > { %189 = vrot.lane.b32.xlu0 %v2355_v24, %s2255_s14 }
  0x57   : > { %191 = vrot.lane.b32.xlu1 %v2358_v25, %s2255_s14 }
  0x5a   : > { %479 = vrot.lane.b32.xlu0 %v2361_v26, %s2255_s14 }
  0x5b   : > { %481 = vrot.lane.b32.xlu1 %v2364_v27, %s2255_s14 }
  0x5e   : > { %193 = vrot.lane.b32.xlu0 %v2373_v30, %s2255_s14 }
  0x5f   : > { %195 = vrot.lane.b32.xlu1 %v2376_v31, %s2255_s14 }
  0x62   : > { %483 = vrot.lane.b32.xlu0 %v2379_v32, %s2255_s14 }
  0x63   : > { %485 = vrot.lane.b32.xlu1 %v2382_v33, %s2255_s14 }
  0x66   : > { %197 = vrot.lane.b32.xlu0 %v2391_v36, %s2255_s14 }
  0x67   : > { %199 = vrot.lane.b32.xlu1 %v2394_v37, %s2255_s14 }
  0x6a   : > { %487 = vrot.lane.b32.xlu0 %v2397_v38, %s2255_s14 }
  0x6b   : > { %489 = vrot.lane.b32.xlu1 %v2400_v39, %s2255_s14 }
  0x6e   : > { %201 = vrot.lane.b32.xlu0 %v2409_v42, %s2255_s14 }
  0x6f   : > { %203 = vrot.lane.b32.xlu1 %v2412_v43, %s2255_s14 }
  0x72   : > { %491 = vrot.lane.b32.xlu0 %v2415_v44, %s2255_s14 }
  0x73   : > { %493 = vrot.lane.b32.xlu1 %v2418_v45, %s2255_s14 }
  0x88   : > { %v2040_v48 = vpop.permute.xlu0 %2039 }
  0x89   : > { %v2042_v49 = vunpack.i.h.bf16 %v2040_v48  ;;  %v2041_v50 = vunpack.i.l.bf16 %v2040_v48  ;;  %v2050_v51 = vpop.permute.xlu1 %2049 }
  0x8a   : > { %v2052_v53 = vunpack.i.h.bf16 %v2050_v51  ;;  %v2051_v54 = vunpack.i.l.bf16 %v2050_v51 }
  0x8b   : > { %v1868_v55 = vpack.c.bf16 %v2042_v49, %v2041_v50 }
  0x8c   : > { %v2045_v56 = vpop.permute.xlu0 %2044  ;;  %v1874_v57 = vpack.c.bf16 %v2052_v53, %v2051_v54 }
  0x8d   : > { %1870 = vmatprep.subr.msk.bf16.mxu0 %vm2494_vm1, %v1868_v55  ;;  %v2047_v58 = vunpack.i.h.bf16 %v2045_v56  ;;  %v2046_v59 = vunpack.i.l.bf16 %v2045_v56  ;;  %v2055_v60 = vpop.permute.xlu1 %2054 }
  0x8e   : > { %1873 = vmatpush3.bf16.xpose.msk.msra.mxu0 %vm2494_vm1, %v1868_v55  ;;  %v2057_v61 = vunpack.i.h.bf16 %v2055_v60  ;;  %v2056_v62 = vunpack.i.l.bf16 %v2055_v60 }
  0x8f   : > { %v1916_v63 = vpack.c.bf16 %v2047_v58, %v2046_v59  ;;  %1876 = vmatprep.subr.msk.bf16.mxu0 %vm2494_vm1, %v1874_v57 }
  0x90   : > { %v1922_v3 = vpack.c.bf16 %v2057_v61, %v2056_v62  ;;  %v2060_v7 = vpop.permute.xlu0 %2059 }
  0x91   : > { %1918 = vmatprep.subr.msk.bf16.mxu1 %vm2494_vm1, %v1916_v63  ;;  %v2062_v10 = vunpack.i.h.bf16 %v2060_v7  ;;  %v2061_v11 = vunpack.i.l.bf16 %v2060_v7  ;;  %v2065_v16 = vpop.permute.xlu1 %2064 }
  0x92   : > { %1921 = vmatpush3.bf16.xpose.msk.msra.mxu1 %vm2494_vm1, %v1916_v63  ;;  %v2067_v22 = vunpack.i.h.bf16 %v2065_v16  ;;  %v2066_v23 = vunpack.i.l.bf16 %v2065_v16 }
  0x93   : > { %v1880_v17 = vpack.c.bf16 %v2062_v10, %v2061_v11  ;;  %1924 = vmatprep.subr.msk.bf16.mxu1 %vm2494_vm1, %v1922_v3 }
  0x94   : > { %v2070_v28 = vpop.permute.xlu0 %2069  ;;  %v1928_v34 = vpack.c.bf16 %v2067_v22, %v2066_v23 }
  0x95   : > { %v2075_v29 = vpop.permute.xlu1 %2074  ;;  %v2072_v35 = vunpack.i.h.bf16 %v2070_v28  ;;  %v2071_v40 = vunpack.i.l.bf16 %v2070_v28 }
  0x96   : > { %1879 = vmatpush3.bf16.xpose.msk.msra.mxu0 %vm2494_vm1, %v1874_v57  ;;  %v2077_v48 = vunpack.i.h.bf16 %v2075_v29  ;;  %v2076_v49 = vunpack.i.l.bf16 %v2075_v29 }
  0x97   : > { %1882 = vmatprep.subr.msk.bf16.mxu0 %vm2494_vm1, %v1880_v17  ;;  %v1886_v47 = vpack.c.bf16 %v2072_v35, %v2071_v40 }
  0x98   : > { %v2080_v41 = vpop.permute.xlu0 %2079  ;;  %v1934_v53 = vpack.c.bf16 %v2077_v48, %v2076_v49 }
  0x99   : > { %v2085_v46 = vpop.permute.xlu1 %2084  ;;  %v2082_v54 = vunpack.i.h.bf16 %v2080_v41  ;;  %v2081_v55 = vunpack.i.l.bf16 %v2080_v41 }
  0x9a   : > { %1927 = vmatpush3.bf16.xpose.msk.msra.mxu1 %vm2494_vm1, %v1922_v3  ;;  %v2087_v59 = vunpack.i.h.bf16 %v2085_v46  ;;  %v2086_v60 = vunpack.i.l.bf16 %v2085_v46 }
  0x9b   : > { %1930 = vmatprep.subr.msk.bf16.mxu1 %vm2494_vm1, %v1928_v34  ;;  %v1892_v58 = vpack.c.bf16 %v2082_v54, %v2081_v55 }
  0x9c   : > { %v2090_v50 = vpop.permute.xlu0 %2089  ;;  %v1940_v63 = vpack.c.bf16 %v2087_v59, %v2086_v60 }
  0x9d   : > { %v2095_v51 = vpop.permute.xlu1 %2094  ;;  %v2092_v3 = vunpack.i.h.bf16 %v2090_v50  ;;  %v2091_v7 = vunpack.i.l.bf16 %v2090_v50 }
  0x9e   : > { %1885 = vmatpush3.bf16.xpose.msk.msra.mxu0 %vm2494_vm1, %v1880_v17  ;;  %v2097_v17 = vunpack.i.h.bf16 %v2095_v51  ;;  %v2096_v22 = vunpack.i.l.bf16 %v2095_v51 }
  0x9f   : > { %1888 = vmatprep.subr.msk.bf16.mxu0 %vm2494_vm1, %v1886_v47  ;;  %v1898_v16 = vpack.c.bf16 %v2092_v3, %v2091_v7 }
  0xa0   : > { %v2100_v56 = vpop.permute.xlu0 %2099  ;;  %v1946_v29 = vpack.c.bf16 %v2097_v17, %v2096_v22 }
  0xa1   : > { %v2105_v57 = vpop.permute.xlu1 %2104  ;;  %v2101_v35 = vunpack.i.l.bf16 %v2100_v56 }
  0xa2   : > { %1933 = vmatpush3.bf16.xpose.msk.msra.mxu1 %vm2494_vm1, %v1928_v34  ;;  %v2102_v34 = vunpack.i.h.bf16 %v2100_v56  ;;  %v2106_v48 = vunpack.i.l.bf16 %v2105_v57 }
  0xa3   : > { %1936 = vmatprep.subr.msk.bf16.mxu1 %vm2494_vm1, %v1934_v53 }
  0xa4   : > { %v2110_v61 = vpop.permute.xlu0 %2109  ;;  %v1904_v46 = vpack.c.bf16 %v2102_v34, %v2101_v35 }
  0xa5   : > { %v2115_v62 = vpop.permute.xlu1 %2114  ;;  %v2111_v54 = vunpack.i.l.bf16 %v2110_v61 }
  0xa6   : > { %1891 = vmatpush3.bf16.xpose.msk.msra.mxu0 %vm2494_vm1, %v1886_v47  ;;  %v2107_v47 = vunpack.i.h.bf16 %v2105_v57  ;;  %v2117_v57 = vunpack.i.h.bf16 %v2115_v62  ;;  %v2116_v59 = vunpack.i.l.bf16 %v2115_v62 }
  0xa7   : > { %1894 = vmatprep.subr.msk.bf16.mxu0 %vm2494_vm1, %v1892_v58 }
  0xa8   : > { %v174_v10 = vpop.permute.xlu0 %173  ;;  %v1952_v51 = vpack.c.bf16 %v2107_v47, %v2106_v48  ;;  %v1958_v3 = vpack.c.bf16 %v2117_v57, %v2116_v59 }
  0xa9   : > { %v176_v11 = vpop.permute.xlu1 %175  ;;  %1676 = vmatprep.mubr.msk.f32.mxu0 %vm237_vm0, %v174_v10 }
  0xaa   : > { %1939 = vmatpush3.bf16.xpose.msk.msra.mxu1 %vm2494_vm1, %v1934_v53  ;;  %v2112_v53 = vunpack.i.h.bf16 %v2110_v61 }
  0xab   : > { %1942 = vmatprep.subr.msk.bf16.mxu1 %vm2494_vm1, %v1940_v63 }
  0xac   : > { %v464_v23 = vpop.permute.xlu0 %463 }
  0xad   : > { %v466_v28 = vpop.permute.xlu1 %465  ;;  %1732 = vmatprep.mubr.msk.f32.mxu1 %vm237_vm0, %v464_v23 }
  0xae   : > { %1897 = vmatpush3.bf16.xpose.msk.msra.mxu0 %vm2494_vm1, %v1892_v58  ;;  %v1910_v58 = vpack.c.bf16 %v2112_v53, %v2111_v54 }
  0xaf   : > { %1900 = vmatprep.subr.msk.bf16.mxu0 %vm2494_vm1, %v1898_v16 }
  0xb0   : > { %v178_v40 = vpop.permute.xlu0 %177 }
  0xb1   : > { %v180_v41 = vpop.permute.xlu1 %179 }
  0xb2   : > { %1945 = vmatpush3.bf16.xpose.msk.msra.mxu1 %vm2494_vm1, %v1940_v63 }
  0xb3   : > { %1948 = vmatprep.subr.msk.bf16.mxu1 %vm2494_vm1, %v1946_v29 }
  0xb4   : > { %v468_v49 = vpop.permute.xlu0 %467 }
  0xb5   : > { %v470_v50 = vpop.permute.xlu1 %469 }
  0xb6   : > { %1903 = vmatpush3.bf16.xpose.msk.msra.mxu0 %vm2494_vm1, %v1898_v16 }
  0xb7   : > { %1906 = vmatprep.subr.msk.bf16.mxu0 %vm2494_vm1, %v1904_v46 }
  0xb8   : > { %v182_v55 = vpop.permute.xlu0 %181 }
  0xb9   : > { %v184_v56 = vpop.permute.xlu1 %183 }
  0xba   : > { %1951 = vmatpush3.bf16.xpose.msk.msra.mxu1 %vm2494_vm1, %v1946_v29 }
  0xbb   : > { %1954 = vmatprep.subr.msk.bf16.mxu1 %vm2494_vm1, %v1952_v51 }
  0xbc   : > { %v472_v60 = vpop.permute.xlu0 %471 }
  0xbd   : > { %v474_v63 = vpop.permute.xlu1 %473 }
  0xbe   : > { %1909 = vmatpush3.bf16.xpose.msk.msra.mxu0 %vm2494_vm1, %v1904_v46 }
  0xbf   : > { %1912 = vmatprep.subr.msk.bf16.mxu0 %vm2494_vm1, %v1910_v58 }
  0xc0   : > { %v186_v61 = vpop.permute.xlu0 %185 }
  0xc1   : > { %v188_v7 = vpop.permute.xlu1 %187 }
  0xc2   : > { %1957 = vmatpush3.bf16.xpose.msk.msra.mxu1 %vm2494_vm1, %v1952_v51 }
  0xc3   : > { %1960 = vmatprep.subr.msk.bf16.mxu1 %vm2494_vm1, %v1958_v3 }
  0xc4   : > { %v476_v10 = vpop.permute.xlu0 %475 }
  0xc5   : > { %v478_v16 = vpop.permute.xlu1 %477 }
  0xc6   : > { %1915 = vmatpush3.bf16.xpose.msk.msra.mxu0 %vm2494_vm1, %v1910_v58 }
  0xc8   : > { %v190_v62 = vpop.permute.xlu0 %189 }
  0xc9   : > { %v192_v17 = vpop.permute.xlu1 %191 }
  0xca   : > { %1963 = vmatpush3.bf16.xpose.msk.msra.mxu1 %vm2494_vm1, %v1958_v3 }
  0xcc   : > { %v480_v22 = vpop.permute.xlu0 %479 }
  0xcd   : > { %1677 = vmatmul.mubr.msk.f32.vlgmr.msra.gmra.mrb[0].mxu0 %vm237_vm0, %v176_v11  ;;  %v482_v23 = vpop.permute.xlu1 %481 }
  0xce   : > { %1679 = vmatprep.mubr.msk.f32.mxu0 %vm237_vm0, %v178_v40 }
  0xd0   : > { %v194_v29 = vpop.permute.xlu0 %193 }
  0xd1   : > { %1680 = vmatmul.mubr.msk.f32.gmra.mrb[2].mxu0 %vm237_vm0, %v180_v41  ;;  %1733 = vmatmul.mubr.msk.f32.vlgmr.msra.gmra.mrb[0].mxu1 %vm237_vm0, %v466_v28  ;;  %v196_v34 = vpop.permute.xlu1 %195 }
  0xd2   : > { %1735 = vmatprep.mubr.msk.f32.mxu1 %vm237_vm0, %v468_v49  ;;  %1682 = vmatprep.mubr.msk.f32.mxu0 %vm237_vm0, %v182_v55 }
  0xd4   : > { %v484_v35 = vpop.permute.xlu0 %483 }
  0xd5   : > { %1736 = vmatmul.mubr.msk.f32.gmra.mrb[2].mxu1 %vm237_vm0, %v470_v50  ;;  %1683 = vmatmul.mubr.msk.f32.gmra.mrb[4].mxu0 %vm237_vm0, %v184_v56  ;;  %v486_v52 = vpop.permute.xlu1 %485 }
  0xd6   : > { %1738 = vmatprep.mubr.msk.f32.mxu1 %vm237_vm0, %v472_v60  ;;  %1685 = vmatprep.mubr.msk.f32.mxu0 %vm237_vm0, %v186_v61 }
  0xd8   : > { %v198_v11 = vpop.permute.xlu0 %197 }
  0xd9   : > { %1739 = vmatmul.mubr.msk.f32.gmra.mrb[4].mxu1 %vm237_vm0, %v474_v63  ;;  %1686 = vmatmul.mubr.msk.f32.gmra.mrb[6].mxu0 %vm237_vm0, %v188_v7  ;;  %v200_v28 = vpop.permute.xlu1 %199 }
  0xda   : > { %1741 = vmatprep.mubr.msk.f32.mxu1 %vm237_vm0, %v476_v10  ;;  %1688 = vmatprep.mubr.msk.f32.mxu0 %vm237_vm0, %v190_v62 }
  0xdc   : > { %v488_v40 = vpop.permute.xlu0 %487 }
  0xdd   : > { %1742 = vmatmul.mubr.msk.f32.gmra.mrb[6].mxu1 %vm237_vm0, %v478_v16  ;;  %1689 = vmatmul.mubr.msk.f32.gmra.mrb[8].mxu0 %vm237_vm0, %v192_v17  ;;  %v490_v41 = vpop.permute.xlu1 %489 }
  0xde   : > { %1744 = vmatprep.mubr.msk.f32.mxu1 %vm237_vm0, %v480_v22  ;;  %1691 = vmatprep.mubr.msk.f32.mxu0 %vm237_vm0, %v194_v29 }
  0xe0   : > { %v202_v46 = vpop.permute.xlu0 %201 }
  0xe1   : > { %1745 = vmatmul.mubr.msk.f32.gmra.mrb[8].mxu1 %vm237_vm0, %v482_v23  ;;  %1692 = vmatmul.mubr.msk.f32.gmra.mrb[10].mxu0 %vm237_vm0, %v196_v34  ;;  %v204_v47 = vpop.permute.xlu1 %203 }
  0xe2   : > { %1747 = vmatprep.mubr.msk.f32.mxu1 %vm237_vm0, %v484_v35  ;;  %1694 = vmatprep.mubr.msk.f32.mxu0 %vm237_vm0, %v198_v11 }
  0xe4   : > { %v492_v48 = vpop.permute.xlu0 %491 }
  0xe5   : > { %1748 = vmatmul.mubr.msk.f32.gmra.mrb[10].mxu1 %vm237_vm0, %v486_v52  ;;  %1695 = vmatmul.mubr.msk.f32.gmra.mrb[12].mxu0 %vm237_vm0, %v200_v28  ;;  %v494_v49 = vpop.permute.xlu1 %493 }
  0xe6   : > { %1750 = vmatprep.mubr.msk.f32.mxu1 %vm237_vm0, %v488_v40  ;;  %1697 = vmatprep.mubr.msk.f32.mxu0 %vm237_vm0, %v202_v46 }
  0xe9   : > { %1751 = vmatmul.mubr.msk.f32.gmra.mrb[12].mxu1 %vm237_vm0, %v490_v41  ;;  %1698 = vmatmul.mubr.msk.f32.gmra.mrb[14].mxu0 %vm237_vm0, %v204_v47 }
  0xea   : > { %1753 = vmatprep.mubr.msk.f32.mxu1 %vm237_vm0, %v492_v48 }
  0xed   : > { %1754 = vmatmul.mubr.msk.f32.gmra.mrb[14].mxu1 %vm237_vm0, %v494_v49 }
 0x1a0   : > { %v1678_v50 = vpop.f32.mrb[0].mxu0 }
 0x1a1   : > { %v2594_v51 = vmul.f32 0.35355338, %v1678_v50  ;;  %v368_v53 = vpop.f32.mrb[1].mxu0 }
 0x1a2   : > { %v2603_v3 = vmul.f32 0.35355338, %v368_v53 }
 0x1a3   : > { %770 = vmax.xlane.f32.xlu1 %v2594_v51 }
 0x1a4   : > { %v1681_v54 = vpop.f32.mrb[2].mxu0  ;;  %v1734_v55 = vpop.f32.mrb[0].mxu1 }
 0x1a5   : > { %v2597_v56 = vmul.f32 0.35355338, %v1734_v55  ;;  %v378_v58 = vpop.f32.mrb[3].mxu0  ;;  %v657_v57 = vpop.f32.mrb[1].mxu1  ;;  %v2613_v34 = vmul.f32 0.35355338, %v1681_v54 }
 0x1a6   : > { %v2599_v59 = vmul.f32 0.35355338, %v378_v58  ;;  %v2611_v22 = vmul.f32 0.35355338, %v657_v57 }
 0x1a7   : > { %802 = vmax.xlane.f32.xlu0 %v2597_v56 }
 0x1a8   : > { %v1737_v60 = vpop.f32.mrb[2].mxu1  ;;  %772 = vmax.xlane.f32.xlu1 %v2599_v59  ;;  %v1684_v63 = vpop.f32.mrb[4].mxu0 }
 0x1a9   : > { %v667_v61 = vpop.f32.mrb[3].mxu1  ;;  %v388_v7 = vpop.f32.mrb[5].mxu0  ;;  %v2619_v41 = vmul.f32 0.35355338, %v1737_v60  ;;  %v2625_v53 = vmul.f32 0.35355338, %v1684_v63 }
 0x1aa   : > { %v2605_v10 = vmul.f32 0.35355338, %v667_v61  ;;  %v2609_v16 = vmul.f32 0.35355338, %v388_v7 }
 0x1ab   : > { %768 = vmax.xlane.f32.xlu0 %v2603_v3 }
 0x1ac   : > { %804 = vmax.xlane.f32.xlu1 %v2605_v10  ;;  %v1740_v62 = vpop.f32.mrb[4].mxu1  ;;  %v1687_v17 = vpop.f32.mrb[6].mxu0 }
 0x1ad   : > { %v677_v23 = vpop.f32.mrb[5].mxu1  ;;  %v398_v29 = vpop.f32.mrb[7].mxu0  ;;  %v2631_v61 = vmul.f32 0.35355338, %v1740_v62  ;;  %v2637_v44 = vmul.f32 0.35355338, %v1687_v17 }
 0x1ae   : > { %v2617_v35 = vmul.f32 0.35355338, %v677_v23  ;;  %v2623_v46 = vmul.f32 0.35355338, %v398_v29 }
 0x1af   : > { %800 = vmax.xlane.f32.xlu0 %v2611_v22 }
 0x1b0   : > { %776 = vmax.xlane.f32.xlu1 %v2609_v16  ;;  %v1743_v52 = vpop.f32.mrb[6].mxu1  ;;  %v1690_v11 = vpop.f32.mrb[8].mxu0 }
 0x1b1   : > { %v687_v28 = vpop.f32.mrb[7].mxu1  ;;  %v408_v40 = vpop.f32.mrb[9].mxu0  ;;  %v2643_v38 = vmul.f32 0.35355338, %v1743_v52  ;;  %v2649_v43 = vmul.f32 0.35355338, %v1690_v11 }
 0x1b2   : > { %v2629_v54 = vmul.f32 0.35355338, %v687_v28  ;;  %v2635_v7 = vmul.f32 0.35355338, %v408_v40 }
 0x1b3   : > { %774 = vmax.xlane.f32.xlu0 %v2613_v34 }
 0x1b4   : > { %808 = vmax.xlane.f32.xlu1 %v2617_v35  ;;  %v1746_v47 = vpop.f32.mrb[8].mxu1  ;;  %v1693_v48 = vpop.f32.mrb[10].mxu0 }
 0x1b5   : > { %v697_v49 = vpop.f32.mrb[9].mxu1  ;;  %v418_v50 = vpop.f32.mrb[11].mxu0  ;;  %v2661_v42 = vmul.f32 0.35355338, %v1693_v48 }
 0x1b6   : > { %v2641_v28 = vmul.f32 0.35355338, %v697_v49  ;;  %v2647_v40 = vmul.f32 0.35355338, %v418_v50  ;;  %v2655_v49 = vmul.f32 0.35355338, %v1746_v47 }
 0x1b7   : > { %806 = vmax.xlane.f32.xlu0 %v2619_v41 }
 0x1b8   : > { %780 = vmax.xlane.f32.xlu1 %v2623_v46  ;;  %v1749_v55 = vpop.f32.mrb[10].mxu1  ;;  %v1696_v58 = vpop.f32.mrb[12].mxu0 }
 0x1b9   : > { %v707_v57 = vpop.f32.mrb[11].mxu1  ;;  %v428_v60 = vpop.f32.mrb[13].mxu0  ;;  %v2667_v50 = vmul.f32 0.35355338, %v1749_v55 }
 0x1ba   : > { %v2653_v17 = vmul.f32 0.35355338, %v707_v57  ;;  %v2659_v52 = vmul.f32 0.35355338, %v428_v60  ;;  %v2673_v57 = vmul.f32 0.35355338, %v1696_v58  ;;  %v1968_v58 = vpack.c.bf16 %v2302_v6, %v2299_v5 }
 0x1bb   : > { %778 = vmax.xlane.f32.xlu0 %v2625_v53 }
 0x1bc   : > { %812 = vmax.xlane.f32.xlu1 %v2629_v54  ;;  %v1752_v63 = vpop.f32.mrb[12].mxu1  ;;  %v1699_v23 = vpop.f32.mrb[14].mxu0 }
 0x1bd   : > { %v717_v29 = vpop.f32.mrb[13].mxu1  ;;  %v438_v45 = vpop.f32.mrb[15].mxu0  ;;  %v2679_v60 = vmul.f32 0.35355338, %v1752_v63  ;;  %v2683_v55 = vmul.f32 0.35355338, %v1699_v23  ;;  %v1996_v63 = vpack.c.bf16 %v2296_v4, %v2291_v2  ;;  %v2000_v23 = vpack.c.bf16 %v2310_v9, %v2307_v8 }
 0x1be   : > { %v2665_v11 = vmul.f32 0.35355338, %v717_v29  ;;  %v2671_v47 = vmul.f32 0.35355338, %v438_v45  ;;  %v1972_v29 = vpack.c.bf16 %v2322_v13, %v2319_v12 }
 0x1bf   : > { %810 = vmax.xlane.f32.xlu0 %v2631_v61  ;;  %1997 = vmatprep.subr.bf16.mxu1 %v1996_v63 }
 0x1c0   : > { %784 = vmax.xlane.f32.xlu1 %v2635_v7  ;;  %v1755_v62 = vpop.f32.mrb[14].mxu1  ;;  %1999 = vmatpush3.bf16.msra.mxu1 %v1996_v63 }
 0x1c1   : > { %v727_v39 = vpop.f32.mrb[15].mxu1  ;;  %v2686_v45 = vmul.f32 0.35355338, %v1755_v62  ;;  %2001 = vmatprep.subr.bf16.mxu1 %v2000_v23 }
 0x1c2   : > { %v2677_v48 = vmul.f32 0.35355338, %v727_v39  ;;  %v1964_v39 = vpack.c.bf16 %v2288_v1, %v2285_v0 }
 0x1c3   : > { %782 = vmax.xlane.f32.xlu0 %v2637_v44 }
 0x1c4   : > { %816 = vmax.xlane.f32.xlu1 %v2641_v28  ;;  %1965 = vmatprep.subr.bf16.mxu0 %v1964_v39 }
 0x1c5   : > { %1967 = vmatpush3.bf16.msra.mxu0 %v1964_v39  ;;  %2003 = vmatpush3.bf16.msra.mxu1 %v2000_v23 }
 0x1c6   : > { %1969 = vmatprep.subr.bf16.mxu0 %v1968_v58 }
 0x1c7   : > { %814 = vmax.xlane.f32.xlu0 %v2643_v38 }
 0x1c8   : > { %788 = vmax.xlane.f32.xlu1 %v2647_v40 }
 0x1c9   : > { %1971 = vmatpush3.bf16.msra.mxu0 %v1968_v58 }
 0x1ca   : > { %1973 = vmatprep.subr.bf16.mxu0 %v1972_v29 }
 0x1cb   : > { %786 = vmax.xlane.f32.xlu0 %v2649_v43 }
 0x1cc   : > { %820 = vmax.xlane.f32.xlu1 %v2653_v17 }
 0x1cd   : > { %1975 = vmatpush3.bf16.msra.mxu0 %v1972_v29 }
 0x1cf   : > { %818 = vmax.xlane.f32.xlu0 %v2655_v49 }
 0x1d0   : > { %792 = vmax.xlane.f32.xlu1 %v2659_v52 }
 0x1d3   : > { %790 = vmax.xlane.f32.xlu0 %v2661_v42 }
 0x1d4   : > { %824 = vmax.xlane.f32.xlu1 %v2665_v11 }
 0x1d7   : > { %822 = vmax.xlane.f32.xlu0 %v2667_v50 }
 0x1d8   : > { %796 = vmax.xlane.f32.xlu1 %v2671_v47 }
 0x1db   : > { %794 = vmax.xlane.f32.xlu0 %v2673_v57 }
 0x1dc   : > { %828 = vmax.xlane.f32.xlu1 %v2677_v48 }
 0x1df   : > { %826 = vmax.xlane.f32.xlu0 %v2679_v60 }
 0x1e3   : > { %798 = vmax.xlane.f32.xlu0 %v2683_v55 }
 0x1e7   : > { %830 = vmax.xlane.f32.xlu0 %v2686_v45 }
 0x230   : > { %v771_v0 = vpop.xlane.xlu1 %770 }
 0x231   : > { %v833_v1 = vsub.f32 %v2594_v51, %v771_v0 }
 0x233   : > { %v866_v2 = vmul.f32 1.442695, %v833_v1 }
 0x234   : > { %v803_v4 = vpop.xlane.xlu0 %802 }
 0x235   : > { %2118 = vpow2.f32 %v866_v2  ;;  %v849_v5 = vsub.f32 %v2597_v56, %v803_v4  ;;  %v773_v6 = vpop.xlane.xlu1 %772 }
 0x236   : > { %v834_v39 = vsub.f32 %v2599_v59, %v773_v6 }
 0x237   : > { %v898_v8 = vmul.f32 1.442695, %v849_v5 }
 0x238   : > { %v769_v9 = vpop.xlane.xlu0 %768  ;;  %v868_v0 = vmul.f32 1.442695, %v834_v39 }
 0x239   : > { %2120 = vpow2.f32 %v898_v8  ;;  %v832_v62 = vsub.f32 %v2603_v3, %v769_v9  ;;  %v805_v12 = vpop.xlane.xlu1 %804 }
 0x23a   : > { %v850_v56 = vsub.f32 %v2605_v10, %v805_v12 }
 0x23b   : > { %v864_v13 = vmul.f32 1.442695, %v832_v62 }
 0x23c   : > { %v801_v58 = vpop.xlane.xlu0 %800  ;;  %v900_v5 = vmul.f32 1.442695, %v850_v56 }
 0x23d   : > { %2122 = vpow2.f32 %v864_v13  ;;  %v848_v63 = vsub.f32 %v2611_v22, %v801_v58  ;;  %v777_v51 = vpop.xlane.xlu1 %776 }
 0x23e   : > { %v836_v22 = vsub.f32 %v2609_v16, %v777_v51 }
 0x23f   : > { %v2705_v23 = vpop.eup %2118  ;;  %v896_v29 = vmul.f32 1.442695, %v848_v63 }
 0x240   : > { %v775_v1 = vpop.xlane.xlu0 %774  ;;  %930 = vadd.xlane.f32.xlu0 %v2705_v23 }
 0x241   : > { %2124 = vpow2.f32 %v896_v29  ;;  %v835_v3 = vsub.f32 %v2613_v34, %v775_v1  ;;  %v809_v2 = vpop.xlane.xlu1 %808  ;;  %v872_v34 = vmul.f32 1.442695, %v836_v22  ;;  %v2004_v1 = vpack.c.bf16 %v2328_v15, %v2325_v14 }
 0x242   : > { %2126 = vpow2.f32 %v868_v0  ;;  %v852_v12 = vsub.f32 %v2617_v35, %v809_v2  ;;  %v1980_v14 = vpack.c.bf16 %v2358_v25, %v2355_v24  ;;  %v2008_v15 = vpack.c.bf16 %v2346_v21, %v2343_v20 }
 0x243   : > { %v2710_v4 = vpop.eup %2120  ;;  %v870_v59 = vmul.f32 1.442695, %v835_v3  ;;  %2005 = vmatprep.subr.bf16.mxu1 %v2004_v1  ;;  %v1984_v20 = vpack.c.bf16 %v2376_v31, %v2373_v30  ;;  %v2012_v21 = vpack.c.bf16 %v2364_v27, %v2361_v26  ;;  %v1988_v26 = vpack.c.bf16 %v2394_v37, %v2391_v36  ;;  %v2972_v37 = vld [vmem:[#allocation4_spill] sm:$0xff] }
 0x244   : > { %v807_v6 = vpop.xlane.xlu0 %806  ;;  %962 = vadd.xlane.f32.xlu0 %v2710_v4  ;;  %2007 = vmatpush3.bf16.msra.mxu1 %v2004_v1  ;;  %v2016_v27 = vpack.c.bf16 %v2382_v33, %v2379_v32 }
 0x245   : > { %2128 = vpow2.f32 %v870_v59  ;;  %v851_v10 = vsub.f32 %v2619_v41, %v807_v6  ;;  %v781_v8 = vpop.xlane.xlu1 %780  ;;  %v904_v41 = vmul.f32 1.442695, %v852_v12  ;;  %2009 = vmatprep.subr.bf16.mxu1 %v2008_v15 }
 0x246   : > { %2130 = vpow2.f32 %v900_v5  ;;  %v838_v51 = vsub.f32 %v2623_v46, %v781_v8 }
 0x247   : > { %v2715_v9 = vpop.eup %2122  ;;  %v902_v62 = vmul.f32 1.442695, %v851_v10 }
 0x248   : > { %v779_v13 = vpop.xlane.xlu0 %778  ;;  %928 = vadd.xlane.f32.xlu1 %v2715_v9  ;;  %v876_v46 = vmul.f32 1.442695, %v838_v51  ;;  %2011 = vmatpush3.bf16.msra.mxu1 %v2008_v15 }
 0x249   : > { %2132 = vpow2.f32 %v902_v62  ;;  %v837_v16 = vsub.f32 %v2625_v53, %v779_v13  ;;  %v813_v39 = vpop.xlane.xlu1 %812  ;;  %v1976_v53 = vpack.c.bf16 %v2340_v19, %v2337_v18  ;;  %2013 = vmatprep.subr.bf16.mxu1 %v2012_v21 }
 0x24a   : > { %2134 = vpow2.f32 %v872_v34  ;;  %v854_v59 = vsub.f32 %v2629_v54, %v813_v39 }
 0x24b   : > { %v2720_v58 = vpop.eup %2124  ;;  %v874_v63 = vmul.f32 1.442695, %v837_v16  ;;  %1977 = vmatprep.subr.bf16.mxu0 %v1976_v53 }
 0x24c   : > { %v811_v29 = vpop.xlane.xlu0 %810  ;;  %960 = vadd.xlane.f32.xlu1 %v2720_v58  ;;  %v2725_v56 = vpop.eup %2126  ;;  %1979 = vmatpush3.bf16.msra.mxu0 %v1976_v53  ;;  %v908_v6 = vmul.f32 1.442695, %v854_v59 }
 0x24d   : > { %2136 = vpow2.f32 %v874_v63  ;;  %v853_v35 = vsub.f32 %v2631_v61, %v811_v29  ;;  %v785_v0 = vpop.xlane.xlu1 %784  ;;  %1981 = vmatprep.subr.bf16.mxu0 %v1980_v14  ;;  %2015 = vmatpush3.bf16.msra.mxu1 %v2012_v21 }
 0x24e   : > { %2138 = vpow2.f32 %v904_v41  ;;  %2017 = vmatprep.subr.bf16.mxu1 %v2016_v27 }
 0x24f   : > { %v2731_v3 = vpop.eup %2128  ;;  %v906_v2 = vmul.f32 1.442695, %v853_v35  ;;  %v2974_v35 = vld [vmem:[#allocation2_spill] sm:$0xff] }
 0x250   : > { %v783_v5 = vpop.xlane.xlu0 %782  ;;  %934 = vadd.xlane.f32.xlu0 %v2731_v3  ;;  %932 = vadd.xlane.f32.xlu1 %v2725_v56  ;;  %v2737_v18 = vpop.eup %2130 }
 0x251   : > { %2140 = vpow2.f32 %v906_v2  ;;  %v839_v61 = vsub.f32 %v2637_v44, %v783_v5  ;;  %v817_v22 = vpop.xlane.xlu1 %816  ;;  %v840_v44 = vsub.f32 %v2635_v7, %v785_v0  ;;  %1983 = vmatpush3.bf16.msra.mxu0 %v1980_v14  ;;  %2019 = vmatpush3.bf16.msra.mxu1 %v2016_v27  ;;  %v2975_v0 = vld [vmem:[#allocation3_spill] sm:$0xff]  ;;  %v2976_v14 = vld [vmem:[#allocation6_spill] sm:$0xff] }
 0x252   : > { %2142 = vpow2.f32 %v876_v46  ;;  %1985 = vmatprep.subr.bf16.mxu0 %v1984_v20  ;;  %v2020_v53 = vpack.c.bf16 %v2975_v0, %v2974_v35 }
 0x253   : > { %v2743_v19 = vpop.eup %2132  ;;  %v878_v54 = vmul.f32 1.442695, %v839_v61  ;;  %v880_v34 = vmul.f32 1.442695, %v840_v44 }
 0x254   : > { %v815_v10 = vpop.xlane.xlu0 %814  ;;  %966 = vadd.xlane.f32.xlu0 %v2743_v19  ;;  %964 = vadd.xlane.f32.xlu1 %v2737_v18  ;;  %v2749_v24 = vpop.eup %2134 }
 0x255   : > { %2144 = vpow2.f32 %v878_v54  ;;  %v855_v8 = vsub.f32 %v2643_v38, %v815_v10  ;;  %v789_v62 = vpop.xlane.xlu1 %788  ;;  %v856_v38 = vsub.f32 %v2641_v28, %v817_v22  ;;  %1987 = vmatpush3.bf16.msra.mxu0 %v1984_v20  ;;  %2021 = vmatprep.subr.bf16.mxu1 %v2020_v53 }
 0x256   : > { %2146 = vpow2.f32 %v908_v6  ;;  %1989 = vmatprep.subr.bf16.mxu0 %v1988_v26  ;;  %2023 = vmatpush3.bf16.msra.mxu1 %v2020_v53 }
 0x257   : > { %v2755_v25 = vpop.eup %2136  ;;  %v910_v7 = vmul.f32 1.442695, %v855_v8  ;;  %v912_v39 = vmul.f32 1.442695, %v856_v38 }
 0x258   : > { %v787_v12 = vpop.xlane.xlu0 %786  ;;  %938 = vadd.xlane.f32.xlu0 %v2755_v25  ;;  %936 = vadd.xlane.f32.xlu1 %v2749_v24  ;;  %v2761_v30 = vpop.eup %2138 }
 0x259   : > { %2148 = vpow2.f32 %v910_v7  ;;  %v841_v13 = vsub.f32 %v2649_v43, %v787_v12  ;;  %v821_v16 = vpop.xlane.xlu1 %820  ;;  %v842_v43 = vsub.f32 %v2647_v40, %v789_v62  ;;  %1991 = vmatpush3.bf16.msra.mxu0 %v1988_v26  ;;  %v2973_v40 = vld [vmem:[#allocation5_spill] sm:$0xff] }
 0x25a   : > { %2150 = vpow2.f32 %v880_v34  ;;  %v1992_v29 = vpack.c.bf16 %v2973_v40, %v2972_v37 }
 0x25b   : > { %v2767_v31 = vpop.eup %2140  ;;  %v882_v28 = vmul.f32 1.442695, %v841_v13  ;;  %v884_v1 = vmul.f32 1.442695, %v842_v43 }
 0x25c   : > { %v819_v63 = vpop.xlane.xlu0 %818  ;;  %970 = vadd.xlane.f32.xlu0 %v2767_v31  ;;  %968 = vadd.xlane.f32.xlu1 %v2761_v30  ;;  %v2773_v36 = vpop.eup %2142 }
 0x25d   : > { %2152 = vpow2.f32 %v882_v28  ;;  %v857_v41 = vsub.f32 %v2655_v49, %v819_v63  ;;  %v793_v51 = vpop.xlane.xlu1 %792  ;;  %v858_v49 = vsub.f32 %v2653_v17, %v821_v16  ;;  %1993 = vmatprep.subr.bf16.mxu0 %v1992_v29  ;;  %v2977_v17 = vld [vmem:[#allocation7_spill] sm:$0xff] }
 0x25e   : > { %2154 = vpow2.f32 %v912_v39  ;;  %1995 = vmatpush3.bf16.msra.mxu0 %v1992_v29  ;;  %v2024_v15 = vpack.c.bf16 %v2977_v17, %v2976_v14  ;;  %v844_v6 = vsub.f32 %v2659_v52, %v793_v51 }
 0x25f   : > { %v2775_v32 = vpop.eup %2144  ;;  %v914_v33 = vmul.f32 1.442695, %v857_v41  ;;  %v916_v54 = vmul.f32 1.442695, %v858_v49 }
 0x260   : > { %v791_v2 = vpop.xlane.xlu0 %790  ;;  %942 = vadd.xlane.f32.xlu0 %v2775_v32  ;;  %940 = vadd.xlane.f32.xlu1 %v2773_v36  ;;  %v2785_v5 = vpop.eup %2146  ;;  %v888_v21 = vmul.f32 1.442695, %v844_v6 }
 0x261   : > { %2156 = vpow2.f32 %v914_v33  ;;  %v843_v46 = vsub.f32 %v2661_v42, %v791_v2  ;;  %v825_v59 = vpop.xlane.xlu1 %824  ;;  %2025 = vmatprep.subr.bf16.mxu1 %v2024_v15 }
 0x262   : > { %2158 = vpow2.f32 %v884_v1  ;;  %2027 = vmatpush3.bf16.msra.mxu1 %v2024_v15  ;;  %v860_v52 = vsub.f32 %v2665_v11, %v825_v59 }
 0x263   : > { %v2787_v61 = vpop.eup %2148  ;;  %v886_v22 = vmul.f32 1.442695, %v843_v46 }
 0x264   : > { %v823_v44 = vpop.xlane.xlu0 %822  ;;  %974 = vadd.xlane.f32.xlu0 %v2787_v61  ;;  %972 = vadd.xlane.f32.xlu1 %v2785_v5  ;;  %v2795_v10 = vpop.eup %2150  ;;  %v920_v13 = vmul.f32 1.442695, %v860_v52 }
 0x265   : > { %2160 = vpow2.f32 %v886_v22  ;;  %v859_v42 = vsub.f32 %v2667_v50, %v823_v44  ;;  %v797_v20 = vpop.xlane.xlu1 %796 }
 0x266   : > { %2162 = vpow2.f32 %v916_v54  ;;  %v846_v16 = vsub.f32 %v2671_v47, %v797_v20 }
 0x267   : > { %v2797_v8 = vpop.eup %2152  ;;  %v918_v62 = vmul.f32 1.442695, %v859_v42 }
 0x268   : > { %v795_v7 = vpop.xlane.xlu0 %794  ;;  %946 = vadd.xlane.f32.xlu0 %v2797_v8  ;;  %944 = vadd.xlane.f32.xlu1 %v2795_v10  ;;  %v2803_v34 = vpop.eup %2154  ;;  %v892_v43 = vmul.f32 1.442695, %v846_v16 }
 0x269   : > { %2164 = vpow2.f32 %v918_v62  ;;  %v845_v50 = vsub.f32 %v2673_v57, %v795_v7  ;;  %v829_v11 = vpop.xlane.xlu1 %828 }
 0x26a   : > { %2166 = vpow2.f32 %v888_v21  ;;  %v862_v63 = vsub.f32 %v2677_v48, %v829_v11 }
 0x26b   : > { %v2805_v38 = vpop.eup %2156  ;;  %v890_v12 = vmul.f32 1.442695, %v845_v50 }
 0x26c   : > { %v827_v26 = vpop.xlane.xlu0 %826  ;;  %978 = vadd.xlane.f32.xlu0 %v2805_v38  ;;  %976 = vadd.xlane.f32.xlu1 %v2803_v34  ;;  %v2811_v28 = vpop.eup %2158  ;;  %v924_v37 = vmul.f32 1.442695, %v862_v63 }
 0x26d   : > { %2168 = vpow2.f32 %v890_v12  ;;  %v861_v27 = vsub.f32 %v2679_v60, %v827_v26 }
 0x26e   : > { %2170 = vpow2.f32 %v920_v13 }
 0x26f   : > { %v2813_v57 = vpop.eup %2160  ;;  %v922_v39 = vmul.f32 1.442695, %v861_v27 }
 0x270   : > { %950 = vadd.xlane.f32.xlu0 %v2813_v57  ;;  %v799_v47 = vpop.xlane.xlu0 %798  ;;  %948 = vadd.xlane.f32.xlu1 %v2811_v28  ;;  %v2819_v51 = vpop.eup %2162 }
 0x271   : > { %2172 = vpow2.f32 %v922_v39  ;;  %v847_v41 = vsub.f32 %v2683_v55, %v799_v47 }
 0x272   : > { %2174 = vpow2.f32 %v892_v43 }
 0x273   : > { %v2821_v60 = vpop.eup %2164  ;;  %v894_v33 = vmul.f32 1.442695, %v847_v41 }
 0x274   : > { %982 = vadd.xlane.f32.xlu0 %v2821_v60  ;;  %v831_v40 = vpop.xlane.xlu0 %830  ;;  %980 = vadd.xlane.f32.xlu1 %v2819_v51  ;;  %v2826_v29 = vpop.eup %2166 }
 0x275   : > { %2176 = vpow2.f32 %v894_v33  ;;  %v863_v48 = vsub.f32 %v2686_v45, %v831_v40 }
 0x276   : > { %2178 = vpow2.f32 %v924_v37 }
 0x277   : > { %v2828_v35 = vpop.eup %2168  ;;  %v926_v55 = vmul.f32 1.442695, %v863_v48 }
 0x278   : > { %954 = vadd.xlane.f32.xlu0 %v2828_v35  ;;  %952 = vadd.xlane.f32.xlu1 %v2826_v29  ;;  %v2832_v0 = vpop.eup %2170 }
 0x279   : > { %2180 = vpow2.f32 %v926_v55 }
 0x27b   : > { %v2834_v53 = vpop.eup %2172 }
 0x27c   : > { %986 = vadd.xlane.f32.xlu0 %v2834_v53  ;;  %984 = vadd.xlane.f32.xlu1 %v2832_v0  ;;  %v2838_v45 = vpop.eup %2174 }
 0x27f   : > { %v2840_v1 = vpop.eup %2176 }
 0x280   : > { %958 = vadd.xlane.f32.xlu0 %v2840_v1  ;;  %956 = vadd.xlane.f32.xlu1 %v2838_v45  ;;  %v2844_v49 = vpop.eup %2178 }
 0x283   : > { %v2846_v2 = vpop.eup %2180 }
 0x284   : > { %990 = vadd.xlane.f32.xlu0 %v2846_v2  ;;  %988 = vadd.xlane.f32.xlu1 %v2844_v49 }
 0x2cd   : > { %v931_v46 = vpop.xlane.xlu0 %930 }
 0x2ce   : > { %2182 = vrcp.f32 %v931_v46 }
 0x2d1   : > { %v963_v22 = vpop.xlane.xlu0 %962 }
 0x2d5   : > { %v929_v59 = vpop.xlane.xlu1 %928 }
 0x2d6   : > { %2184 = vrcp.f32 %v929_v59 }
 0x2d7   : > { %2186 = vrcp.f32 %v963_v22 }
 0x2d8   : > { %v2183_v54 = vpop.eup %2182 }
 0x2d9   : > { %v961_v14 = vpop.xlane.xlu1 %960  ;;  %v1025_v20 = vmul.f32 %v2183_v54, %v2705_v23 }
 0x2da   : > { %2188 = vrcp.f32 %v961_v14 }
 0x2dd   : > { %v935_v17 = vpop.xlane.xlu0 %934  ;;  %v933_v15 = vpop.xlane.xlu1 %932 }
 0x2de   : > { %2190 = vrcp.f32 %v935_v17 }
 0x2df   : > { %2192 = vrcp.f32 %v933_v15 }
 0x2e0   : > { %v2185_v6 = vpop.eup %2184 }
 0x2e1   : > { %v967_v44 = vpop.xlane.xlu0 %966  ;;  %v965_v42 = vpop.xlane.xlu1 %964  ;;  %v1024_v62 = vmul.f32 %v2185_v6, %v2715_v9 }
 0x2e2   : > { %2194 = vrcp.f32 %v967_v44  ;;  %v2187_v21 = vpop.eup %2186 }
 0x2e3   : > { %2196 = vrcp.f32 %v965_v42  ;;  %1788 = vmatprep.mubr.f32.mxu0 %v1024_v62  ;;  %v1041_v13 = vmul.f32 %v2187_v21, %v2710_v4 }
 0x2e4   : > { %v2189_v52 = vpop.eup %2188  ;;  %1789 = vmatmul.mubr.f32.vlgmr.msra.gmra.mrb[16].mxu0 %v1025_v20 }
 0x2e5   : > { %v939_v7 = vpop.xlane.xlu0 %938  ;;  %v937_v50 = vpop.xlane.xlu1 %936  ;;  %v1040_v12 = vmul.f32 %v2189_v52, %v2720_v58 }
 0x2e6   : > { %2198 = vrcp.f32 %v939_v7 }
 0x2e7   : > { %2200 = vrcp.f32 %v937_v50  ;;  %1844 = vmatprep.mubr.f32.mxu1 %v1040_v12 }
 0x2e8   : > { %v2191_v16 = vpop.eup %2190  ;;  %1845 = vmatmul.mubr.f32.vlgmr.msra.gmra.mrb[16].mxu1 %v1041_v13 }
 0x2e9   : > { %v2193_v9 = vpop.eup %2192  ;;  %v971_v26 = vpop.xlane.xlu0 %970  ;;  %v1027_v11 = vmul.f32 %v2191_v16, %v2731_v3 }
 0x2ea   : > { %v969_v23 = vpop.xlane.xlu1 %968  ;;  %2202 = vrcp.f32 %v971_v26  ;;  %v1026_v27 = vmul.f32 %v2193_v9, %v2725_v56 }
 0x2eb   : > { %2204 = vrcp.f32 %v969_v23 }
 0x2ec   : > { %v2195_v39 = vpop.eup %2194  ;;  %1791 = vmatprep.mubr.f32.mxu0 %v1026_v27 }
 0x2ed   : > { %v2197_v43 = vpop.eup %2196  ;;  %1792 = vmatmul.mubr.f32.gmra.mrb[18].mxu0 %v1027_v11  ;;  %v943_v58 = vpop.xlane.xlu0 %942  ;;  %v1043_v63 = vmul.f32 %v2195_v39, %v2743_v19 }
 0x2ee   : > { %v941_v4 = vpop.xlane.xlu1 %940  ;;  %2206 = vrcp.f32 %v943_v58  ;;  %v1042_v47 = vmul.f32 %v2197_v43, %v2737_v18 }
 0x2ef   : > { %2208 = vrcp.f32 %v941_v4 }
 0x2f0   : > { %v2199_v41 = vpop.eup %2198  ;;  %1847 = vmatprep.mubr.f32.mxu1 %v1042_v47 }
 0x2f1   : > { %v2201_v33 = vpop.eup %2200  ;;  %1848 = vmatmul.mubr.f32.gmra.mrb[18].mxu1 %v1043_v63  ;;  %v975_v3 = vpop.xlane.xlu0 %974  ;;  %v1029_v56 = vmul.f32 %v2199_v41, %v2755_v25 }
 0x2f2   : > { %v973_v37 = vpop.xlane.xlu1 %972  ;;  %2210 = vrcp.f32 %v975_v3  ;;  %v1028_v40 = vmul.f32 %v2201_v33, %v2749_v24 }
 0x2f3   : > { %2212 = vrcp.f32 %v973_v37 }
 0x2f4   : > { %v2203_v48 = vpop.eup %2202  ;;  %1794 = vmatprep.mubr.f32.mxu0 %v1028_v40 }
 0x2f5   : > { %v2205_v55 = vpop.eup %2204  ;;  %1795 = vmatmul.mubr.f32.gmra.mrb[20].mxu0 %v1029_v56  ;;  %v947_v19 = vpop.xlane.xlu0 %946  ;;  %v1045_v18 = vmul.f32 %v2203_v48, %v2767_v31 }
 0x2f6   : > { %v945_v46 = vpop.xlane.xlu1 %944  ;;  %2214 = vrcp.f32 %v947_v19  ;;  %v1044_v59 = vmul.f32 %v2205_v55, %v2761_v30 }
 0x2f7   : > { %2216 = vrcp.f32 %v945_v46 }
 0x2f8   : > { %v2207_v22 = vpop.eup %2206  ;;  %1850 = vmatprep.mubr.f32.mxu1 %v1044_v59 }
 0x2f9   : > { %v2209_v14 = vpop.eup %2208  ;;  %1851 = vmatmul.mubr.f32.gmra.mrb[20].mxu1 %v1045_v18  ;;  %v979_v25 = vpop.xlane.xlu0 %978  ;;  %v1031_v24 = vmul.f32 %v2207_v22, %v2775_v32 }
 0x2fa   : > { %v977_v17 = vpop.xlane.xlu1 %976  ;;  %2218 = vrcp.f32 %v979_v25  ;;  %v1030_v15 = vmul.f32 %v2209_v14, %v2773_v36 }
 0x2fb   : > { %2220 = vrcp.f32 %v977_v17 }
 0x2fc   : > { %v2211_v54 = vpop.eup %2210  ;;  %1797 = vmatprep.mubr.f32.mxu0 %v1030_v15 }
 0x2fd   : > { %v2213_v6 = vpop.eup %2212  ;;  %1798 = vmatmul.mubr.f32.gmra.mrb[22].mxu0 %v1031_v24  ;;  %v951_v31 = vpop.xlane.xlu0 %950  ;;  %v1047_v30 = vmul.f32 %v2211_v54, %v2787_v61 }
 0x2fe   : > { %v949_v44 = vpop.xlane.xlu1 %948  ;;  %2222 = vrcp.f32 %v951_v31  ;;  %v1046_v42 = vmul.f32 %v2213_v6, %v2785_v5 }
 0x2ff   : > { %2224 = vrcp.f32 %v949_v44 }
 0x300   : > { %v2215_v62 = vpop.eup %2214  ;;  %1853 = vmatprep.mubr.f32.mxu1 %v1046_v42 }
 0x301   : > { %v2217_v20 = vpop.eup %2216  ;;  %1854 = vmatmul.mubr.f32.gmra.mrb[22].mxu1 %v1047_v30  ;;  %v983_v32 = vpop.xlane.xlu0 %982  ;;  %v1033_v36 = vmul.f32 %v2215_v62, %v2797_v8 }
 0x302   : > { %v981_v21 = vpop.xlane.xlu1 %980  ;;  %2226 = vrcp.f32 %v983_v32  ;;  %v1032_v52 = vmul.f32 %v2217_v20, %v2795_v10 }
 0x303   : > { %2228 = vrcp.f32 %v981_v21 }
 0x304   : > { %v2219_v7 = vpop.eup %2218  ;;  %1800 = vmatprep.mubr.f32.mxu0 %v1032_v52 }
 0x305   : > { %v2221_v50 = vpop.eup %2220  ;;  %1801 = vmatmul.mubr.f32.gmra.mrb[24].mxu0 %v1033_v36  ;;  %v955_v61 = vpop.xlane.xlu0 %954  ;;  %v1049_v5 = vmul.f32 %v2219_v7, %v2805_v38 }
 0x306   : > { %v953_v12 = vpop.xlane.xlu1 %952  ;;  %2230 = vrcp.f32 %v955_v61  ;;  %v1048_v13 = vmul.f32 %v2221_v50, %v2803_v34 }
 0x307   : > { %2232 = vrcp.f32 %v953_v12 }
 0x308   : > { %v2223_v16 = vpop.eup %2222  ;;  %1856 = vmatprep.mubr.f32.mxu1 %v1048_v13 }
 0x309   : > { %v2225_v9 = vpop.eup %2224  ;;  %1857 = vmatmul.mubr.f32.gmra.mrb[24].mxu1 %v1049_v5  ;;  %v987_v8 = vpop.xlane.xlu0 %986  ;;  %v1035_v10 = vmul.f32 %v2223_v16, %v2813_v57 }
 0x30a   : > { %v985_v26 = vpop.xlane.xlu1 %984  ;;  %2234 = vrcp.f32 %v987_v8  ;;  %v1034_v23 = vmul.f32 %v2225_v9, %v2811_v28 }
 0x30b   : > { %2236 = vrcp.f32 %v985_v26 }
 0x30c   : > { %v2227_v11 = vpop.eup %2226  ;;  %1803 = vmatprep.mubr.f32.mxu0 %v1034_v23 }
 0x30d   : > { %v2229_v27 = vpop.eup %2228  ;;  %1804 = vmatmul.mubr.f32.gmra.mrb[26].mxu0 %v1035_v10  ;;  %v959_v38 = vpop.xlane.xlu0 %958  ;;  %v1051_v34 = vmul.f32 %v2227_v11, %v2821_v60 }
 0x30e   : > { %v957_v39 = vpop.xlane.xlu1 %956  ;;  %2238 = vrcp.f32 %v959_v38  ;;  %v1050_v43 = vmul.f32 %v2229_v27, %v2819_v51 }
 0x30f   : > { %2240 = vrcp.f32 %v957_v39 }
 0x310   : > { %v2231_v58 = vpop.eup %2230  ;;  %1859 = vmatprep.mubr.f32.mxu1 %v1050_v43 }
 0x311   : > { %v2233_v4 = vpop.eup %2232  ;;  %1860 = vmatmul.mubr.f32.gmra.mrb[26].mxu1 %v1051_v34  ;;  %v991_v57 = vpop.xlane.xlu0 %990  ;;  %v1037_v28 = vmul.f32 %v2231_v58, %v2828_v35 }
 0x312   : > { %v989_v63 = vpop.xlane.xlu1 %988  ;;  %2242 = vrcp.f32 %v991_v57  ;;  %v1036_v47 = vmul.f32 %v2233_v4, %v2826_v29 }
 0x313   : > { %2244 = vrcp.f32 %v989_v63 }
 0x314   : > { %v2235_v41 = vpop.eup %2234  ;;  %1806 = vmatprep.mubr.f32.mxu0 %v1036_v47 }
 0x315   : > { %v2237_v33 = vpop.eup %2236  ;;  %1807 = vmatmul.mubr.f32.gmra.mrb[28].mxu0 %v1037_v28  ;;  %v1053_v60 = vmul.f32 %v2235_v41, %v2834_v53 }
 0x316   : > { %v1052_v51 = vmul.f32 %v2237_v33, %v2832_v0 }
 0x318   : > { %v2239_v3 = vpop.eup %2238  ;;  %1862 = vmatprep.mubr.f32.mxu1 %v1052_v51 }
 0x319   : > { %v2241_v37 = vpop.eup %2240  ;;  %1863 = vmatmul.mubr.f32.gmra.mrb[28].mxu1 %v1053_v60  ;;  %v1039_v56 = vmul.f32 %v2239_v3, %v2840_v1 }
 0x31a   : > { %v1038_v35 = vmul.f32 %v2241_v37, %v2838_v45 }
 0x31c   : > { %v2243_v40 = vpop.eup %2242  ;;  %1809 = vmatprep.mubr.f32.mxu0 %v1038_v35 }
 0x31d   : > { %v2245_v29 = vpop.eup %2244  ;;  %1810 = vmatmul.mubr.f32.gmra.mrb[30].mxu0 %v1039_v56  ;;  %v1055_v48 = vmul.f32 %v2243_v40, %v2846_v2 }
 0x31e   : > { %v1054_v55 = vmul.f32 %v2245_v29, %v2844_v49 }
 0x320   : > { %1865 = vmatprep.mubr.f32.mxu1 %v1054_v55 }
 0x321   : > { %1866 = vmatmul.mubr.f32.gmra.mrb[30].mxu1 %v1055_v48 }
 0x3b7   : > { %v1790_v0 = vpop.f32.mrb[16].mxu0 }
 0x3b8   : > { %1348 = vst.msk [vmem:[%s2887_s17 + $0x8] sm:$0xff] %vm1346_vm2, %v1790_v0  ;;  %v1122_v53 = vpop.f32.mrb[17].mxu0 }
 0x3b9   : > { %1347 = vst.msk [vmem:[%s2887_s17] sm:$0xff] %vm1346_vm2, %v1122_v53 }
 0x3bb   : > { %v1846_v45 = vpop.f32.mrb[16].mxu1 }
 0x3bc   : > { %1364 = vst.msk [vmem:[%s2887_s17 + $0x88] sm:$0xff] %vm1346_vm2, %v1846_v45  ;;  %v1267_v1 = vpop.f32.mrb[17].mxu1 }
 0x3bd   : > { %1363 = vst.msk [vmem:[%s2887_s17 + $0x80] sm:$0xff] %vm1346_vm2, %v1267_v1 }
 0x3c0   : > { %v1793_v49 = vpop.f32.mrb[18].mxu0 }
 0x3c1   : > { %1350 = vst.msk [vmem:[%s2887_s17 + $0x18] sm:$0xff] %vm1346_vm2, %v1793_v49  ;;  %v1132_v2 = vpop.f32.mrb[19].mxu0 }
 0x3c2   : > { %1349 = vst.msk [vmem:[%s2887_s17 + $0x10] sm:$0xff] %vm1346_vm2, %v1132_v2 }
 0x3c4   : > { %v1849_v19 = vpop.f32.mrb[18].mxu1 }
 0x3c5   : > { %1366 = vst.msk [vmem:[%s2887_s17 + $0x98] sm:$0xff] %vm1346_vm2, %v1849_v19  ;;  %v1277_v46 = vpop.f32.mrb[19].mxu1 }
 0x3c6   : > { %1365 = vst.msk [vmem:[%s2887_s17 + $0x90] sm:$0xff] %vm1346_vm2, %v1277_v46 }
 0x3c8   : > { %v1796_v18 = vpop.f32.mrb[20].mxu0 }
 0x3c9   : > { %1352 = vst.msk [vmem:[%s2887_s17 + $0x28] sm:$0xff] %vm1346_vm2, %v1796_v18  ;;  %v1142_v59 = vpop.f32.mrb[21].mxu0 }
 0x3ca   : > { %1351 = vst.msk [vmem:[%s2887_s17 + $0x20] sm:$0xff] %vm1346_vm2, %v1142_v59 }
 0x3cc   : > { %v1852_v22 = vpop.f32.mrb[20].mxu1 }
 0x3cd   : > { %1368 = vst.msk [vmem:[%s2887_s17 + $0xa8] sm:$0xff] %vm1346_vm2, %v1852_v22  ;;  %v1287_v14 = vpop.f32.mrb[21].mxu1 }
 0x3ce   : > { %1367 = vst.msk [vmem:[%s2887_s17 + $0xa0] sm:$0xff] %vm1346_vm2, %v1287_v14 }
 0x3d0   : > { %v1799_v25 = vpop.f32.mrb[22].mxu0 }
 0x3d1   : > { %1354 = vst.msk [vmem:[%s2887_s17 + $0x38] sm:$0xff] %vm1346_vm2, %v1799_v25  ;;  %v1152_v17 = vpop.f32.mrb[23].mxu0 }
 0x3d2   : > { %1353 = vst.msk [vmem:[%s2887_s17 + $0x30] sm:$0xff] %vm1346_vm2, %v1152_v17 }
 0x3d4   : > { %v1855_v24 = vpop.f32.mrb[22].mxu1 }
 0x3d5   : > { %1370 = vst.msk [vmem:[%s2887_s17 + $0xb8] sm:$0xff] %vm1346_vm2, %v1855_v24  ;;  %v1297_v15 = vpop.f32.mrb[23].mxu1 }
 0x3d6   : > { %1369 = vst.msk [vmem:[%s2887_s17 + $0xb0] sm:$0xff] %vm1346_vm2, %v1297_v15 }
 0x3d8   : > { %v1802_v54 = vpop.f32.mrb[24].mxu0 }
 0x3d9   : > { %1356 = vst.msk [vmem:[%s2887_s17 + $0x48] sm:$0xff] %vm1346_vm2, %v1802_v54  ;;  %v1162_v6 = vpop.f32.mrb[25].mxu0 }
 0x3da   : > { %1355 = vst.msk [vmem:[%s2887_s17 + $0x40] sm:$0xff] %vm1346_vm2, %v1162_v6 }
 0x3dc   : > { %v1858_v31 = vpop.f32.mrb[24].mxu1 }
 0x3dd   : > { %1372 = vst.msk [vmem:[%s2887_s17 + $0xc8] sm:$0xff] %vm1346_vm2, %v1858_v31  ;;  %v1307_v44 = vpop.f32.mrb[25].mxu1 }
 0x3de   : > { %1371 = vst.msk [vmem:[%s2887_s17 + $0xc0] sm:$0xff] %vm1346_vm2, %v1307_v44 }
 0x3e0   : > { %v1805_v30 = vpop.f32.mrb[26].mxu0 }
 0x3e1   : > { %1358 = vst.msk [vmem:[%s2887_s17 + $0x58] sm:$0xff] %vm1346_vm2, %v1805_v30  ;;  %v1172_v42 = vpop.f32.mrb[27].mxu0 }
 0x3e2   : > { %1357 = vst.msk [vmem:[%s2887_s17 + $0x50] sm:$0xff] %vm1346_vm2, %v1172_v42 }
 0x3e4   : > { %v1861_v62 = vpop.f32.mrb[26].mxu1 }
 0x3e5   : > { %1374 = vst.msk [vmem:[%s2887_s17 + $0xd8] sm:$0xff] %vm1346_vm2, %v1861_v62  ;;  %v1317_v20 = vpop.f32.mrb[27].mxu1 }
 0x3e6   : > { %1373 = vst.msk [vmem:[%s2887_s17 + $0xd0] sm:$0xff] %vm1346_vm2, %v1317_v20 }
 0x3e8   : > { %v1808_v32 = vpop.f32.mrb[28].mxu0 }
 0x3e9   : > { %1360 = vst.msk [vmem:[%s2887_s17 + $0x68] sm:$0xff] %vm1346_vm2, %v1808_v32  ;;  %v1182_v21 = vpop.f32.mrb[29].mxu0 }
 0x3ea   : > { %1359 = vst.msk [vmem:[%s2887_s17 + $0x60] sm:$0xff] %vm1346_vm2, %v1182_v21 }
 0x3ec   : > { %v1864_v36 = vpop.f32.mrb[28].mxu1 }
 0x3ed   : > { %1376 = vst.msk [vmem:[%s2887_s17 + $0xe8] sm:$0xff] %vm1346_vm2, %v1864_v36  ;;  %v1327_v52 = vpop.f32.mrb[29].mxu1 }
 0x3ee   : > { %1375 = vst.msk [vmem:[%s2887_s17 + $0xe0] sm:$0xff] %vm1346_vm2, %v1327_v52 }
 0x3f0   : > { %v1811_v7 = vpop.f32.mrb[30].mxu0 }
 0x3f1   : > { %1362 = vst.msk [vmem:[%s2887_s17 + $0x78] sm:$0xff] %vm1346_vm2, %v1811_v7  ;;  %v1192_v50 = vpop.f32.mrb[31].mxu0 }
 0x3f2   : > { %1361 = vst.msk [vmem:[%s2887_s17 + $0x70] sm:$0xff] %vm1346_vm2, %v1192_v50 }
 0x3f4   : > { %v1867_v61 = vpop.f32.mrb[30].mxu1 }
 0x3f5   : > { %1378 = vst.msk [vmem:[%s2887_s17 + $0xf8] sm:$0xff] %vm1346_vm2, %v1867_v61  ;;  %v1337_v12 = vpop.f32.mrb[31].mxu1 }
 0x3f6   : > { %1377 = vst.msk [vmem:[%s2887_s17 + $0xf0] sm:$0xff] %vm1346_vm2, %v1337_v12 }
 0x3f7 PF: > { %s11_s6 = sadd.s32 1, %s2252_s6  }
 0x3f8   : > { %p8_p4 = scmp.ge.s32.totalorder %s11_s6, 6  }
 0x3fa   :  { %10 = sbr.rel (!%p8_p4) target bundleno = 1 (0x1), region = 54 }

</bundles_post_ra>
